<compile_context>
chip_gen: v5e
topology: v5e:2x2
jax: 0.10.0
libtpu: 0.0.40
codegen_flags: <defaults>
</compile_context>

<pallas_src>
import functools

import jax
import jax.numpy as jnp
from jax.experimental import pallas as pl
from jax.experimental.pallas import tpu as pltpu

EPS = 1e-5   # PyTorch LayerNorm default
LANE = 128


def _round_up(x, m):
    return (x + m - 1) // m * m


def _vmem_limit_bytes(frac=0.75, fallback_capacity=128 * 1024 * 1024):
    """Per-generation VMEM limit with headroom (v7x: 64 MiB/TC, v5e/v6e: 128 MiB)."""
    try:
        cap = getattr(pltpu.get_tpu_info(), "vmem_capacity_bytes", fallback_capacity)
    except Exception:
        cap = fallback_capacity
    return int(cap * frac)


def _bf16_elementwise_ok():
    """bf16 VALU exists on v6e/v7x; keep elementwise math in f32 on v5 and older."""
    try:
        kind = jax.devices()[0].device_kind.lower()
        return not any(s in kind for s in ("v2", "v3", "v4", "v5"))
    except Exception:
        return False


def _masked_layernorm(x, gamma, beta, n_real, d_pad):
    """LayerNorm over the last dim of an (M, d_pad) f32 tile.

    Only the first `n_real` columns are real; statistics are masked so padded
    columns never contribute.  gamma/beta are zero-padded, so padded output
    columns come out exactly 0.  Rows that are entirely padding stay row-local
    garbage and are sliced off in the wrapper.
    """
    if n_real == d_pad:
        xm = x
        mask = None
    else:
        mask = (jax.lax.broadcasted_iota(jnp.int32, (1, d_pad), 1) < n_real
                ).astype(x.dtype)
        xm = x * mask
    inv_n = 1.0 / float(n_real)
    mean = jnp.sum(xm, axis=-1, keepdims=True) * inv_n
    diff = x - mean
    if mask is not None:
        diff = diff * mask
    var = jnp.sum(diff * diff, axis=-1, keepdims=True) * inv_n
    inv = jax.lax.rsqrt(var + EPS)
    return diff * inv * gamma + beta


def _mlp_layer(h, w1_ref, b1_ref, w2_ref, b2_ref, relu_bf16):
    """One (Linear -> ReLU -> Linear) layer on a 2-D (M, Din) f32 activation."""
    a = jnp.dot(h.astype(jnp.bfloat16), w1_ref[0],
                preferred_element_type=jnp.float32) + b1_ref[0]
    if relu_bf16:
        # cast is monotone and preserves 0 => relu(cast(x)) == cast(relu(x))
        a = jnp.maximum(a.astype(jnp.bfloat16), 0.0)
    else:
        a = jnp.maximum(a, 0.0).astype(jnp.bfloat16)
    return jnp.dot(a, w2_ref[0], preferred_element_type=jnp.float32) + b2_ref[0]


def token_phase_kernel(x_ref, g_ref, b_ref, w1_ref, b1_ref, w2_ref, b2_ref,
                       y1_ref, h_ref, *, n_layers, t_real, relu_bf16):
    """Token mixing: y1 = token_mixer(token_norm(x^T))^T + x.

    Grid = (batch_tiles, n_layers); the layer axis streams one layer's weights
    per step while h_ref (VMEM scratch) carries the activation across layers.
    """
    l = pl.program_id(1)
    bsz, tp, cp = x_ref.shape

    @pl.when(l == 0)
    def _init():
        # One XLU transpose per batch block (amortized over L layer steps):
        # token mixing needs tokens on the lane axis.
        xt = jnp.transpose(x_ref[...], (0, 2, 1)).reshape(bsz * cp, tp)
        h_ref[...] = _masked_layernorm(xt, g_ref[...], b_ref[...], t_real, tp)

    h = _mlp_layer(h_ref[...], w1_ref, b1_ref, w2_ref, b2_ref, relu_bf16)
    h_ref[...] = h

    @pl.when(l == n_layers - 1)
    def _fin():
        y1_ref[...] = (jnp.transpose(h.reshape(bsz, cp, tp), (0, 2, 1))
                       + x_ref[...])


def channel_phase_kernel(y1_ref, g_ref, b_ref, w1_ref, b1_ref, w2_ref, b2_ref,
                         out_ref, s_ref, *, n_layers, c_real, relu_bf16):
    """Channel mixing: out = channel_mixer(channel_norm(y1)) + y1 (no transpose)."""
    l = pl.program_id(1)
    bsz, tp, cp = y1_ref.shape

    @pl.when(l == 0)
    def _init():
        s_ref[...] = _masked_layernorm(y1_ref[...].reshape(bsz * tp, cp),
                                       g_ref[...], b_ref[...], c_real, cp)

    g = _mlp_layer(s_ref[...], w1_ref, b1_ref, w2_ref, b2_ref, relu_bf16)
    s_ref[...] = g

    @pl.when(l == n_layers - 1)
    def _fin():
        out_ref[...] = g.reshape(bsz, tp, cp) + y1_ref[...]


def mlp_mixer_pallas(x, params, *, n_layers: int, batch_tile=None):
    B, T, C = x.shape
    (ln_tg, ln_tb, tw1, tb1, tw2, tb2,
     ln_cg, ln_cb, cw1, cb1, cw2, cb2) = params
    L = tw1.shape[0]
    assert L == n_layers
    H = tw1.shape[-1]

    Tp = _round_up(T, LANE)
    Cp = _round_up(C, LANE)
    Hp = _round_up(H, LANE)

    # Batch tile: target MXU M ~= 256 on the smaller phase (v6e/v7x); cap so the
    # batch grid keeps >= 2 "parallel" steps (v7x has 2 TensorCores per chip).
    if batch_tile is None:
        batch_tile = max(1, -(-256 // min(Tp, Cp)))
    bsz = max(1, min(B, batch_tile))
    if B >= 2:
        bsz = min(bsz, (B + 1) // 2)
    Bp = _round_up(B, bsz)
    nb = Bp // bsz

    f32, bf16 = jnp.float32, jnp.bfloat16

    def pad_to(a, shape):
        return jnp.pad(a, [(0, s - d) for d, s in zip(a.shape, shape)])

    # Zero padding everywhere: padded weight rows/cols, biases and LN params are
    # zero, so padded feature columns produce exact zeros through the MLPs.
    xp = pad_to(x.astype(f32), (Bp, Tp, Cp))
    gt_p = pad_to(ln_tg.reshape(1, T).astype(f32), (1, Tp))
    bt_p = pad_to(ln_tb.reshape(1, T).astype(f32), (1, Tp))
    gc_p = pad_to(ln_cg.reshape(1, C).astype(f32), (1, Cp))
    bc_p = pad_to(ln_cb.reshape(1, C).astype(f32), (1, Cp))
    tw1_p = pad_to(tw1.astype(f32), (L, Tp, Hp)).astype(bf16)
    tw2_p = pad_to(tw2.astype(f32), (L, Hp, Tp)).astype(bf16)
    cw1_p = pad_to(cw1.astype(f32), (L, Cp, Hp)).astype(bf16)
    cw2_p = pad_to(cw2.astype(f32), (L, Hp, Cp)).astype(bf16)
    tb1_p = pad_to(tb1.reshape(L, 1, H).astype(f32), (L, 1, Hp))
    tb2_p = pad_to(tb2.reshape(L, 1, T).astype(f32), (L, 1, Tp))
    cb1_p = pad_to(cb1.reshape(L, 1, H).astype(f32), (L, 1, Hp))
    cb2_p = pad_to(cb2.reshape(L, 1, C).astype(f32), (L, 1, Cp))

    relu_bf16 = _bf16_elementwise_ok()
    cparams = pltpu.CompilerParams(
        dimension_semantics=("parallel", "arbitrary"),
        vmem_limit_bytes=_vmem_limit_bytes(),
    )

    act_spec = pl.BlockSpec((bsz, Tp, Cp), lambda b, l: (b, 0, 0))
    ln_spec = lambda d: pl.BlockSpec((1, d), lambda b, l: (0, 0))
    w_spec = lambda din, dout: pl.BlockSpec((1, din, dout), lambda b, l: (l, 0, 0))
    b_spec = lambda d: pl.BlockSpec((1, 1, d), lambda b, l: (l, 0, 0))

    # ---- phase 1: token mixing (layer-streamed) ------------------------------
    y1 = pl.pallas_call(
        functools.partial(token_phase_kernel, n_layers=L, t_real=T,
                          relu_bf16=relu_bf16),
        out_shape=jax.ShapeDtypeStruct((Bp, Tp, Cp), f32),
        grid_spec=pltpu.PrefetchScalarGridSpec(
            num_scalar_prefetch=0,
            grid=(nb, L),
            in_specs=[act_spec,                      # x tile (resident over layers)
                      ln_spec(Tp), ln_spec(Tp),      # token LN gamma/beta
                      w_spec(Tp, Hp), b_spec(Hp),    # layer-l W1/b1 (streamed)
                      w_spec(Hp, Tp), b_spec(Tp)],   # layer-l W2/b2 (streamed)
            out_specs=act_spec,
            scratch_shapes=[pltpu.VMEM((bsz * Cp, Tp), f32)],
        ),
        compiler_params=cparams,
    )(xp, gt_p, bt_p, tw1_p, tb1_p, tw2_p, tb2_p)

    # ---- phase 2: channel mixing (layer-streamed) ----------------------------
    outp = pl.pallas_call(
        functools.partial(channel_phase_kernel, n_layers=L, c_real=C,
                          relu_bf16=relu_bf16),
        out_shape=jax.ShapeDtypeStruct((Bp, Tp, Cp), f32),
        grid_spec=pltpu.PrefetchScalarGridSpec(
            num_scalar_prefetch=0,
            grid=(nb, L),
            in_specs=[act_spec,                      # y1 tile (resident over layers)
                      ln_spec(Cp), ln_spec(Cp),      # channel LN gamma/beta
                      w_spec(Cp, Hp), b_spec(Hp),    # layer-l W1/b1 (streamed)
                      w_spec(Hp, Cp), b_spec(Cp)],   # layer-l W2/b2 (streamed)
            out_specs=act_spec,
            scratch_shapes=[pltpu.VMEM((bsz * Tp, Cp), f32)],
        ),
        compiler_params=cparams,
    )(y1, gc_p, bc_p, cw1_p, cb1_p, cw2_p, cb2_p)

    return outp[:B, :T, :C]


def make_params(key, num_tokens, num_channels, n_layers, hidden_dim):
    """Deterministic synthetic parameters (nn.Linear stored as (in, out): y = x @ W + b)."""
    ks = jax.random.split(key, 8)
    scale = lambda fan_in: 1.0 / jnp.sqrt(jnp.float32(fan_in))
    gt = jnp.ones((1, num_tokens), jnp.float32)
    bt = jnp.zeros((1, num_tokens), jnp.float32)
    gc = jnp.ones((1, num_channels), jnp.float32)
    bc = jnp.zeros((1, num_channels), jnp.float32)
    tw1 = jax.random.normal(ks[0], (n_layers, num_tokens, hidden_dim), jnp.float32) * scale(num_tokens)
    tb1 = jax.random.normal(ks[1], (n_layers, hidden_dim), jnp.float32) * 0.01
    tw2 = jax.random.normal(ks[2], (n_layers, hidden_dim, num_tokens), jnp.float32) * scale(hidden_dim)
    tb2 = jax.random.normal(ks[3], (n_layers, num_tokens), jnp.float32) * 0.01
    cw1 = jax.random.normal(ks[4], (n_layers, num_channels, hidden_dim), jnp.float32) * scale(num_channels)
    cb1 = jax.random.normal(ks[5], (n_layers, hidden_dim), jnp.float32) * 0.01
    cw2 = jax.random.normal(ks[6], (n_layers, hidden_dim, num_channels), jnp.float32) * scale(hidden_dim)
    cb2 = jax.random.normal(ks[7], (n_layers, num_channels), jnp.float32) * 0.01
    return (gt, bt, tw1, tb1, tw2, tb2, gc, bc, cw1, cb1, cw2, cb2)


def mlp_mixer_ref(x, params, *, n_layers: int, matmul_dtype=jnp.bfloat16):
    """Pure-JAX reference of the PyTorch forward (matmuls in `matmul_dtype`, f32 accum)."""
    (gt, bt, tw1, tb1, tw2, tb2, gc, bc, cw1, cb1, cw2, cb2) = params

    def ln(v, g, b):
        m = jnp.mean(v, axis=-1, keepdims=True)
        var = jnp.mean((v - m) ** 2, axis=-1, keepdims=True)
        return (v - m) / jnp.sqrt(var + EPS) * g + b

    def mm(a, w):
        return jnp.dot(a.astype(matmul_dtype), w.astype(matmul_dtype),
                       preferred_element_type=jnp.float32)

    h = jnp.transpose(x, (0, 2, 1))               # (B, C, T)
    h = ln(h, gt[0], bt[0])
    for l in range(n_layers):
        h = mm(jnp.maximum(mm(h, tw1[l]) + tb1[l], 0.0), tw2[l]) + tb2[l]
    y1 = jnp.transpose(h, (0, 2, 1)) + x          # (B, T, C)
    g = ln(y1, gc[0], bc[0])
    for l in range(n_layers):
        g = mm(jnp.maximum(mm(g, cw1[l]) + cb1[l], 0.0), cw2[l]) + cb2[l]
    return g + y1


if __name__ == "__main__":
    B, T, C = 2, 16, 8          # batch, num_tokens, num_channels
    n_layers, hidden = 2, 32

    key = jax.random.PRNGKey(0)
    kx, kp = jax.random.split(key)
    x = jax.random.normal(kx, (B, T, C), jnp.float32)
    params = make_params(kp, T, C, n_layers, hidden)

    run = jax.jit(functools.partial(mlp_mixer_pallas, n_layers=n_layers))
    out = jax.block_until_ready(run(x, params))

    # Reference with the same bf16-at-the-MXU casting (tight check of the
    # kernel's padding/masking/matmul/streaming logic vs the PyTorch forward).
    ref = mlp_mixer_ref(x, params, n_layers=n_layers, matmul_dtype=jnp.bfloat16)

    assert out.shape == (B, T, C)
    assert jnp.allclose(out, ref, atol=1e-2, rtol=1e-2), "mismatch vs reference"
    print("KERNEL_OK")
</pallas_src>

<mosaic_0001>
module attributes {stable_mosaic.version = 11 : i64} {
  func.func @token_phase_kernel(%arg0: i32, %arg1: i32, %arg2: memref<1x128x128xf32, #tpu.memory_space<vmem>>, %arg3: memref<1x128xf32, #tpu.memory_space<vmem>>, %arg4: memref<1x128xf32, #tpu.memory_space<vmem>>, %arg5: memref<1x128x128xbf16, #tpu.memory_space<vmem>>, %arg6: memref<1x1x128xf32, #tpu.memory_space<vmem>>, %arg7: memref<1x128x128xbf16, #tpu.memory_space<vmem>>, %arg8: memref<1x1x128xf32, #tpu.memory_space<vmem>>, %arg9: memref<1x128x128xf32, #tpu.memory_space<vmem>>, %arg10: memref<128x128xf32, #tpu.memory_space<vmem>>) attributes {dimension_semantics = [#tpu.dimension_semantics<parallel>, #tpu.dimension_semantics<arbitrary>], iteration_bounds = array<i64: 2, 2>, scalar_prefetch = 0 : i64, scratch_operands = 1 : i64, tpu.core_type = #tpu.core_type<tc>, window_params = [{transform_indices = @transform_0, window_bounds = array<i64: 1, 128, 128>}, {pipeline_mode = #tpu.pipeline_mode<synchronous>, transform_indices = @transform_1, window_bounds = array<i64: 1, 128>}, {pipeline_mode = #tpu.pipeline_mode<synchronous>, transform_indices = @transform_2, window_bounds = array<i64: 1, 128>}, {transform_indices = @transform_3, window_bounds = array<i64: 1, 128, 128>}, {transform_indices = @transform_4, window_bounds = array<i64: 1, 1, 128>}, {transform_indices = @transform_5, window_bounds = array<i64: 1, 128, 128>}, {transform_indices = @transform_6, window_bounds = array<i64: 1, 1, 128>}, {transform_indices = @transform_7, window_bounds = array<i64: 1, 128, 128>}]} {
    %c0_i32 = arith.constant 0 : i32
    %0 = arith.cmpi eq, %arg1, %c0_i32 : i32
    %1 = arith.extui %0 : i1 to i32
    %c0_i32_0 = arith.constant 0 : i32
    %2 = arith.cmpi ne, %1, %c0_i32_0 : i32
    scf.if %2 {
      %c0_19 = arith.constant 0 : index
      %c0_20 = arith.constant 0 : index
      %c0_21 = arith.constant 0 : index
      %26 = vector.load %arg2[%c0_19, %c0_20, %c0_21] : memref<1x128x128xf32, #tpu.memory_space<vmem>>, vector<1x128x128xf32>
      %27 = tpu.transpose %26, [0, 2, 1] : vector<1x128x128xf32> -> vector<1x128x128xf32>
      %28 = vector.shape_cast %27 : vector<1x128x128xf32> to vector<128x128xf32>
      %c0_22 = arith.constant 0 : index
      %c0_23 = arith.constant 0 : index
      %29 = vector.load %arg3[%c0_22, %c0_23] : memref<1x128xf32, #tpu.memory_space<vmem>>, vector<1x128xf32>
      %c0_24 = arith.constant 0 : index
      %c0_25 = arith.constant 0 : index
      %30 = vector.load %arg4[%c0_24, %c0_25] : memref<1x128xf32, #tpu.memory_space<vmem>>, vector<1x128xf32>
      %31 = tpu.iota {dimensions = array<i32: 1>} : vector<1x128xi32>
      %c16_i32 = arith.constant 16 : i32
      %32 = vector.broadcast %c16_i32 : i32 to vector<1x128xi32>
      %33 = arith.cmpi slt, %31, %32 : vector<1x128xi32>
      %34 = arith.extui %33 : vector<1x128xi1> to vector<1x128xi32>
      %35 = arith.sitofp %34 : vector<1x128xi32> to vector<1x128xf32>
      %36 = vector.broadcast %35 : vector<1x128xf32> to vector<128x128xf32>
      %37 = arith.mulf %28, %36 : vector<128x128xf32>
      %cst_26 = arith.constant dense<0.000000e+00> : vector<128xf32>
      %38 = vector.multi_reduction <add>, %37, %cst_26 [1] : vector<128x128xf32> to vector<128xf32>
      %39 = vector.shape_cast %38 : vector<128xf32> to vector<128x1xf32>
      %cst_27 = arith.constant 6.250000e-02 : f32
      %40 = vector.broadcast %cst_27 : f32 to vector<128x1xf32>
      %41 = arith.mulf %39, %40 : vector<128x1xf32>
      %42 = vector.broadcast %41 : vector<128x1xf32> to vector<128x128xf32>
      %43 = arith.subf %28, %42 : vector<128x128xf32>
      %44 = vector.broadcast %35 : vector<1x128xf32> to vector<128x128xf32>
      %45 = arith.mulf %43, %44 : vector<128x128xf32>
      %46 = arith.mulf %45, %45 : vector<128x128xf32>
      %cst_28 = arith.constant dense<0.000000e+00> : vector<128xf32>
      %47 = vector.multi_reduction <add>, %46, %cst_28 [1] : vector<128x128xf32> to vector<128xf32>
      %48 = vector.shape_cast %47 : vector<128xf32> to vector<128x1xf32>
      %cst_29 = arith.constant 6.250000e-02 : f32
      %49 = vector.broadcast %cst_29 : f32 to vector<128x1xf32>
      %50 = arith.mulf %48, %49 : vector<128x1xf32>
      %cst_30 = arith.constant 9.99999974E-6 : f32
      %51 = vector.broadcast %cst_30 : f32 to vector<128x1xf32>
      %52 = arith.addf %50, %51 : vector<128x1xf32>
      %53 = math.rsqrt %52 : vector<128x1xf32>
      %54 = vector.broadcast %53 : vector<128x1xf32> to vector<128x128xf32>
      %55 = arith.mulf %45, %54 : vector<128x128xf32>
      %56 = vector.broadcast %29 : vector<1x128xf32> to vector<128x128xf32>
      %57 = arith.mulf %55, %56 : vector<128x128xf32>
      %58 = vector.broadcast %30 : vector<1x128xf32> to vector<128x128xf32>
      %59 = arith.addf %57, %58 : vector<128x128xf32>
      %c0_31 = arith.constant 0 : index
      %c0_32 = arith.constant 0 : index
      %60 = vector.load %arg10[%c0_31, %c0_32] : memref<128x128xf32, #tpu.memory_space<vmem>>, vector<128x128xf32>
      tpu.vector_store %arg10[%c0_31, %c0_32], %59 {strides = array<i32>} : memref<128x128xf32, #tpu.memory_space<vmem>>, vector<128x128xf32>,
    } else {
    }
    %c0 = arith.constant 0 : index
    %c0_1 = arith.constant 0 : index
    %3 = vector.load %arg10[%c0, %c0_1] : memref<128x128xf32, #tpu.memory_space<vmem>>, vector<128x128xf32>
    %4 = arith.truncf %3 : vector<128x128xf32> to vector<128x128xbf16>
    %c0_2 = arith.constant 0 : index
    %c0_3 = arith.constant 0 : index
    %c0_4 = arith.constant 0 : index
    %5 = vector.load %arg5[%c0_2, %c0_3, %c0_4] : memref<1x128x128xbf16, #tpu.memory_space<vmem>>, vector<1x128x128xbf16>
    %6 = vector.shape_cast %5 : vector<1x128x128xbf16> to vector<128x128xbf16>
    %cst = arith.constant dense<0.000000e+00> : vector<128x128xf32>
    %7 = tpu.matmul %4, %6, %cst {dimension_numbers = #tpu.dot_dimension_numbers<[1], [0], [0], [1], [0, 0, 1, 1], [], []>} : vector<128x128xbf16>, vector<128x128xbf16>, vector<128x128xf32> -> vector<128x128xf32>
    %c0_5 = arith.constant 0 : index
    %c0_6 = arith.constant 0 : index
    %c0_7 = arith.constant 0 : index
    %8 = vector.load %arg6[%c0_5, %c0_6, %c0_7] : memref<1x1x128xf32, #tpu.memory_space<vmem>>, vector<1x1x128xf32>
    %9 = vector.shape_cast %8 : vector<1x1x128xf32> to vector<1x128xf32>
    %10 = vector.broadcast %9 : vector<1x128xf32> to vector<128x128xf32>
    %11 = arith.addf %7, %10 : vector<128x128xf32>
    %12 = arith.truncf %11 : vector<128x128xf32> to vector<128x128xbf16>
    %cst_8 = arith.constant 0.000000e+00 : bf16
    %13 = vector.broadcast %cst_8 : bf16 to vector<128x128xbf16>
    %14 = arith.maximumf %12, %13 : vector<128x128xbf16>
    %c0_9 = arith.constant 0 : index
    %c0_10 = arith.constant 0 : index
    %c0_11 = arith.constant 0 : index
    %15 = vector.load %arg7[%c0_9, %c0_10, %c0_11] : memref<1x128x128xbf16, #tpu.memory_space<vmem>>, vector<1x128x128xbf16>
    %16 = vector.shape_cast %15 : vector<1x128x128xbf16> to vector<128x128xbf16>
    %cst_12 = arith.constant dense<0.000000e+00> : vector<128x128xf32>
    %17 = tpu.matmul %14, %16, %cst_12 {dimension_numbers = #tpu.dot_dimension_numbers<[1], [0], [0], [1], [0, 0, 1, 1], [], []>} : vector<128x128xbf16>, vector<128x128xbf16>, vector<128x128xf32> -> vector<128x128xf32>
    %c0_13 = arith.constant 0 : index
    %c0_14 = arith.constant 0 : index
    %c0_15 = arith.constant 0 : index
    %18 = vector.load %arg8[%c0_13, %c0_14, %c0_15] : memref<1x1x128xf32, #tpu.memory_space<vmem>>, vector<1x1x128xf32>
    %19 = vector.shape_cast %18 : vector<1x1x128xf32> to vector<1x128xf32>
    %20 = vector.broadcast %19 : vector<1x128xf32> to vector<128x128xf32>
    %21 = arith.addf %17, %20 : vector<128x128xf32>
    %c0_16 = arith.constant 0 : index
    %c0_17 = arith.constant 0 : index
    %22 = vector.load %arg10[%c0_16, %c0_17] : memref<128x128xf32, #tpu.memory_space<vmem>>, vector<128x128xf32>
    tpu.vector_store %arg10[%c0_16, %c0_17], %21 {strides = array<i32>} : memref<128x128xf32, #tpu.memory_space<vmem>>, vector<128x128xf32>,
    %c1_i32 = arith.constant 1 : i32
    %23 = arith.cmpi eq, %arg1, %c1_i32 : i32
    %24 = arith.extui %23 : i1 to i32
    %c0_i32_18 = arith.constant 0 : i32
    %25 = arith.cmpi ne, %24, %c0_i32_18 : i32
    scf.if %25 {
      %26 = vector.shape_cast %21 : vector<128x128xf32> to vector<1x128x128xf32>
      %27 = tpu.transpose %26, [0, 2, 1] : vector<1x128x128xf32> -> vector<1x128x128xf32>
      %c0_19 = arith.constant 0 : index
      %c0_20 = arith.constant 0 : index
      %c0_21 = arith.constant 0 : index
      %28 = vector.load %arg2[%c0_19, %c0_20, %c0_21] : memref<1x128x128xf32, #tpu.memory_space<vmem>>, vector<1x128x128xf32>
      %29 = arith.addf %27, %28 : vector<1x128x128xf32>
      %c0_22 = arith.constant 0 : index
      %c0_23 = arith.constant 0 : index
      %c0_24 = arith.constant 0 : index
      %30 = vector.load %arg9[%c0_22, %c0_23, %c0_24] : memref<1x128x128xf32, #tpu.memory_space<vmem>>, vector<1x128x128xf32>
      tpu.vector_store %arg9[%c0_22, %c0_23, %c0_24], %29 {strides = array<i32>} : memref<1x128x128xf32, #tpu.memory_space<vmem>>, vector<1x128x128xf32>,
    } else {
    }
    return
  }
  func.func @transform_0(%arg0: i32, %arg1: i32) -> (i32, i32, i32) {
    %c0_i32 = arith.constant 0 : i32
    %c0_i32_0 = arith.constant 0 : i32
    %c0_i32_1 = arith.constant 0 : i32
    return %arg0, %c0_i32, %c0_i32_0 : i32, i32, i32
  }
  func.func @transform_1(%arg0: i32, %arg1: i32) -> (i32, i32) {
    %c0_i32 = arith.constant 0 : i32
    %c0_i32_0 = arith.constant 0 : i32
    %c0_i32_1 = arith.constant 0 : i32
    return %c0_i32, %c0_i32_0 : i32, i32
  }
  func.func @transform_2(%arg0: i32, %arg1: i32) -> (i32, i32) {
    %c0_i32 = arith.constant 0 : i32
    %c0_i32_0 = arith.constant 0 : i32
    %c0_i32_1 = arith.constant 0 : i32
    return %c0_i32, %c0_i32_0 : i32, i32
  }
  func.func @transform_3(%arg0: i32, %arg1: i32) -> (i32, i32, i32) {
    %c0_i32 = arith.constant 0 : i32
    %c0_i32_0 = arith.constant 0 : i32
    %c0_i32_1 = arith.constant 0 : i32
    return %arg1, %c0_i32, %c0_i32_0 : i32, i32, i32
  }
  func.func @transform_4(%arg0: i32, %arg1: i32) -> (i32, i32, i32) {
    %c0_i32 = arith.constant 0 : i32
    %c0_i32_0 = arith.constant 0 : i32
    %c0_i32_1 = arith.constant 0 : i32
    return %arg1, %c0_i32, %c0_i32_0 : i32, i32, i32
  }
  func.func @transform_5(%arg0: i32, %arg1: i32) -> (i32, i32, i32) {
    %c0_i32 = arith.constant 0 : i32
    %c0_i32_0 = arith.constant 0 : i32
    %c0_i32_1 = arith.constant 0 : i32
    return %arg1, %c0_i32, %c0_i32_0 : i32, i32, i32
  }
  func.func @transform_6(%arg0: i32, %arg1: i32) -> (i32, i32, i32) {
    %c0_i32 = arith.constant 0 : i32
    %c0_i32_0 = arith.constant 0 : i32
    %c0_i32_1 = arith.constant 0 : i32
    return %arg1, %c0_i32, %c0_i32_0 : i32, i32, i32
  }
  func.func @transform_7(%arg0: i32, %arg1: i32) -> (i32, i32, i32) {
    %c0_i32 = arith.constant 0 : i32
    %c0_i32_0 = arith.constant 0 : i32
    %c0_i32_1 = arith.constant 0 : i32
    return %arg0, %c0_i32, %c0_i32_0 : i32, i32, i32
  }
}

module attributes {stable_mosaic.version = 11 : i64} {
  func.func @channel_phase_kernel(%arg0: i32, %arg1: i32, %arg2: memref<1x128x128xf32, #tpu.memory_space<vmem>>, %arg3: memref<1x128xf32, #tpu.memory_space<vmem>>, %arg4: memref<1x128xf32, #tpu.memory_space<vmem>>, %arg5: memref<1x128x128xbf16, #tpu.memory_space<vmem>>, %arg6: memref<1x1x128xf32, #tpu.memory_space<vmem>>, %arg7: memref<1x128x128xbf16, #tpu.memory_space<vmem>>, %arg8: memref<1x1x128xf32, #tpu.memory_space<vmem>>, %arg9: memref<1x128x128xf32, #tpu.memory_space<vmem>>, %arg10: memref<128x128xf32, #tpu.memory_space<vmem>>) attributes {dimension_semantics = [#tpu.dimension_semantics<parallel>, #tpu.dimension_semantics<arbitrary>], iteration_bounds = array<i64: 2, 2>, scalar_prefetch = 0 : i64, scratch_operands = 1 : i64, tpu.core_type = #tpu.core_type<tc>, window_params = [{transform_indices = @transform_0, window_bounds = array<i64: 1, 128, 128>}, {pipeline_mode = #tpu.pipeline_mode<synchronous>, transform_indices = @transform_1, window_bounds = array<i64: 1, 128>}, {pipeline_mode = #tpu.pipeline_mode<synchronous>, transform_indices = @transform_2, window_bounds = array<i64: 1, 128>}, {transform_indices = @transform_3, window_bounds = array<i64: 1, 128, 128>}, {transform_indices = @transform_4, window_bounds = array<i64: 1, 1, 128>}, {transform_indices = @transform_5, window_bounds = array<i64: 1, 128, 128>}, {transform_indices = @transform_6, window_bounds = array<i64: 1, 1, 128>}, {transform_indices = @transform_7, window_bounds = array<i64: 1, 128, 128>}]} {
    %c0_i32 = arith.constant 0 : i32
    %0 = arith.cmpi eq, %arg1, %c0_i32 : i32
    %1 = arith.extui %0 : i1 to i32
    %c0_i32_0 = arith.constant 0 : i32
    %2 = arith.cmpi ne, %1, %c0_i32_0 : i32
    scf.if %2 {
      %c0_19 = arith.constant 0 : index
      %c0_20 = arith.constant 0 : index
      %c0_21 = arith.constant 0 : index
      %26 = vector.load %arg2[%c0_19, %c0_20, %c0_21] : memref<1x128x128xf32, #tpu.memory_space<vmem>>, vector<1x128x128xf32>
      %27 = vector.shape_cast %26 : vector<1x128x128xf32> to vector<128x128xf32>
      %c0_22 = arith.constant 0 : index
      %c0_23 = arith.constant 0 : index
      %28 = vector.load %arg3[%c0_22, %c0_23] : memref<1x128xf32, #tpu.memory_space<vmem>>, vector<1x128xf32>
      %c0_24 = arith.constant 0 : index
      %c0_25 = arith.constant 0 : index
      %29 = vector.load %arg4[%c0_24, %c0_25] : memref<1x128xf32, #tpu.memory_space<vmem>>, vector<1x128xf32>
      %30 = tpu.iota {dimensions = array<i32: 1>} : vector<1x128xi32>
      %c8_i32 = arith.constant 8 : i32
      %31 = vector.broadcast %c8_i32 : i32 to vector<1x128xi32>
      %32 = arith.cmpi slt, %30, %31 : vector<1x128xi32>
      %33 = arith.extui %32 : vector<1x128xi1> to vector<1x128xi32>
      %34 = arith.sitofp %33 : vector<1x128xi32> to vector<1x128xf32>
      %35 = vector.broadcast %34 : vector<1x128xf32> to vector<128x128xf32>
      %36 = arith.mulf %27, %35 : vector<128x128xf32>
      %cst_26 = arith.constant dense<0.000000e+00> : vector<128xf32>
      %37 = vector.multi_reduction <add>, %36, %cst_26 [1] : vector<128x128xf32> to vector<128xf32>
      %38 = vector.shape_cast %37 : vector<128xf32> to vector<128x1xf32>
      %cst_27 = arith.constant 1.250000e-01 : f32
      %39 = vector.broadcast %cst_27 : f32 to vector<128x1xf32>
      %40 = arith.mulf %38, %39 : vector<128x1xf32>
      %41 = vector.broadcast %40 : vector<128x1xf32> to vector<128x128xf32>
      %42 = arith.subf %27, %41 : vector<128x128xf32>
      %43 = vector.broadcast %34 : vector<1x128xf32> to vector<128x128xf32>
      %44 = arith.mulf %42, %43 : vector<128x128xf32>
      %45 = arith.mulf %44, %44 : vector<128x128xf32>
      %cst_28 = arith.constant dense<0.000000e+00> : vector<128xf32>
      %46 = vector.multi_reduction <add>, %45, %cst_28 [1] : vector<128x128xf32> to vector<128xf32>
      %47 = vector.shape_cast %46 : vector<128xf32> to vector<128x1xf32>
      %cst_29 = arith.constant 1.250000e-01 : f32
      %48 = vector.broadcast %cst_29 : f32 to vector<128x1xf32>
      %49 = arith.mulf %47, %48 : vector<128x1xf32>
      %cst_30 = arith.constant 9.99999974E-6 : f32
      %50 = vector.broadcast %cst_30 : f32 to vector<128x1xf32>
      %51 = arith.addf %49, %50 : vector<128x1xf32>
      %52 = math.rsqrt %51 : vector<128x1xf32>
      %53 = vector.broadcast %52 : vector<128x1xf32> to vector<128x128xf32>
      %54 = arith.mulf %44, %53 : vector<128x128xf32>
      %55 = vector.broadcast %28 : vector<1x128xf32> to vector<128x128xf32>
      %56 = arith.mulf %54, %55 : vector<128x128xf32>
      %57 = vector.broadcast %29 : vector<1x128xf32> to vector<128x128xf32>
      %58 = arith.addf %56, %57 : vector<128x128xf32>
      %c0_31 = arith.constant 0 : index
      %c0_32 = arith.constant 0 : index
      %59 = vector.load %arg10[%c0_31, %c0_32] : memref<128x128xf32, #tpu.memory_space<vmem>>, vector<128x128xf32>
      tpu.vector_store %arg10[%c0_31, %c0_32], %58 {strides = array<i32>} : memref<128x128xf32, #tpu.memory_space<vmem>>, vector<128x128xf32>,
    } else {
    }
    %c0 = arith.constant 0 : index
    %c0_1 = arith.constant 0 : index
    %3 = vector.load %arg10[%c0, %c0_1] : memref<128x128xf32, #tpu.memory_space<vmem>>, vector<128x128xf32>
    %4 = arith.truncf %3 : vector<128x128xf32> to vector<128x128xbf16>
    %c0_2 = arith.constant 0 : index
    %c0_3 = arith.constant 0 : index
    %c0_4 = arith.constant 0 : index
    %5 = vector.load %arg5[%c0_2, %c0_3, %c0_4] : memref<1x128x128xbf16, #tpu.memory_space<vmem>>, vector<1x128x128xbf16>
    %6 = vector.shape_cast %5 : vector<1x128x128xbf16> to vector<128x128xbf16>
    %cst = arith.constant dense<0.000000e+00> : vector<128x128xf32>
    %7 = tpu.matmul %4, %6, %cst {dimension_numbers = #tpu.dot_dimension_numbers<[1], [0], [0], [1], [0, 0, 1, 1], [], []>} : vector<128x128xbf16>, vector<128x128xbf16>, vector<128x128xf32> -> vector<128x128xf32>
    %c0_5 = arith.constant 0 : index
    %c0_6 = arith.constant 0 : index
    %c0_7 = arith.constant 0 : index
    %8 = vector.load %arg6[%c0_5, %c0_6, %c0_7] : memref<1x1x128xf32, #tpu.memory_space<vmem>>, vector<1x1x128xf32>
    %9 = vector.shape_cast %8 : vector<1x1x128xf32> to vector<1x128xf32>
    %10 = vector.broadcast %9 : vector<1x128xf32> to vector<128x128xf32>
    %11 = arith.addf %7, %10 : vector<128x128xf32>
    %12 = arith.truncf %11 : vector<128x128xf32> to vector<128x128xbf16>
    %cst_8 = arith.constant 0.000000e+00 : bf16
    %13 = vector.broadcast %cst_8 : bf16 to vector<128x128xbf16>
    %14 = arith.maximumf %12, %13 : vector<128x128xbf16>
    %c0_9 = arith.constant 0 : index
    %c0_10 = arith.constant 0 : index
    %c0_11 = arith.constant 0 : index
    %15 = vector.load %arg7[%c0_9, %c0_10, %c0_11] : memref<1x128x128xbf16, #tpu.memory_space<vmem>>, vector<1x128x128xbf16>
    %16 = vector.shape_cast %15 : vector<1x128x128xbf16> to vector<128x128xbf16>
    %cst_12 = arith.constant dense<0.000000e+00> : vector<128x128xf32>
    %17 = tpu.matmul %14, %16, %cst_12 {dimension_numbers = #tpu.dot_dimension_numbers<[1], [0], [0], [1], [0, 0, 1, 1], [], []>} : vector<128x128xbf16>, vector<128x128xbf16>, vector<128x128xf32> -> vector<128x128xf32>
    %c0_13 = arith.constant 0 : index
    %c0_14 = arith.constant 0 : index
    %c0_15 = arith.constant 0 : index
    %18 = vector.load %arg8[%c0_13, %c0_14, %c0_15] : memref<1x1x128xf32, #tpu.memory_space<vmem>>, vector<1x1x128xf32>
    %19 = vector.shape_cast %18 : vector<1x1x128xf32> to vector<1x128xf32>
    %20 = vector.broadcast %19 : vector<1x128xf32> to vector<128x128xf32>
    %21 = arith.addf %17, %20 : vector<128x128xf32>
    %c0_16 = arith.constant 0 : index
    %c0_17 = arith.constant 0 : index
    %22 = vector.load %arg10[%c0_16, %c0_17] : memref<128x128xf32, #tpu.memory_space<vmem>>, vector<128x128xf32>
    tpu.vector_store %arg10[%c0_16, %c0_17], %21 {strides = array<i32>} : memref<128x128xf32, #tpu.memory_space<vmem>>, vector<128x128xf32>,
    %c1_i32 = arith.constant 1 : i32
    %23 = arith.cmpi eq, %arg1, %c1_i32 : i32
    %24 = arith.extui %23 : i1 to i32
    %c0_i32_18 = arith.constant 0 : i32
    %25 = arith.cmpi ne, %24, %c0_i32_18 : i32
    scf.if %25 {
      %26 = vector.shape_cast %21 : vector<128x128xf32> to vector<1x128x128xf32>
      %c0_19 = arith.constant 0 : index
      %c0_20 = arith.constant 0 : index
      %c0_21 = arith.constant 0 : index
      %27 = vector.load %arg2[%c0_19, %c0_20, %c0_21] : memref<1x128x128xf32, #tpu.memory_space<vmem>>, vector<1x128x128xf32>
      %28 = arith.addf %26, %27 : vector<1x128x128xf32>
      %c0_22 = arith.constant 0 : index
      %c0_23 = arith.constant 0 : index
      %c0_24 = arith.constant 0 : index
      %29 = vector.load %arg9[%c0_22, %c0_23, %c0_24] : memref<1x128x128xf32, #tpu.memory_space<vmem>>, vector<1x128x128xf32>
      tpu.vector_store %arg9[%c0_22, %c0_23, %c0_24], %28 {strides = array<i32>} : memref<1x128x128xf32, #tpu.memory_space<vmem>>, vector<1x128x128xf32>,
    } else {
    }
    return
  }
  func.func @transform_0(%arg0: i32, %arg1: i32) -> (i32, i32, i32) {
    %c0_i32 = arith.constant 0 : i32
    %c0_i32_0 = arith.constant 0 : i32
    %c0_i32_1 = arith.constant 0 : i32
    return %arg0, %c0_i32, %c0_i32_0 : i32, i32, i32
  }
  func.func @transform_1(%arg0: i32, %arg1: i32) -> (i32, i32) {
    %c0_i32 = arith.constant 0 : i32
    %c0_i32_0 = arith.constant 0 : i32
    %c0_i32_1 = arith.constant 0 : i32
    return %c0_i32, %c0_i32_0 : i32, i32
  }
  func.func @transform_2(%arg0: i32, %arg1: i32) -> (i32, i32) {
    %c0_i32 = arith.constant 0 : i32
    %c0_i32_0 = arith.constant 0 : i32
    %c0_i32_1 = arith.constant 0 : i32
    return %c0_i32, %c0_i32_0 : i32, i32
  }
  func.func @transform_3(%arg0: i32, %arg1: i32) -> (i32, i32, i32) {
    %c0_i32 = arith.constant 0 : i32
    %c0_i32_0 = arith.constant 0 : i32
    %c0_i32_1 = arith.constant 0 : i32
    return %arg1, %c0_i32, %c0_i32_0 : i32, i32, i32
  }
  func.func @transform_4(%arg0: i32, %arg1: i32) -> (i32, i32, i32) {
    %c0_i32 = arith.constant 0 : i32
    %c0_i32_0 = arith.constant 0 : i32
    %c0_i32_1 = arith.constant 0 : i32
    return %arg1, %c0_i32, %c0_i32_0 : i32, i32, i32
  }
  func.func @transform_5(%arg0: i32, %arg1: i32) -> (i32, i32, i32) {
    %c0_i32 = arith.constant 0 : i32
    %c0_i32_0 = arith.constant 0 : i32
    %c0_i32_1 = arith.constant 0 : i32
    return %arg1, %c0_i32, %c0_i32_0 : i32, i32, i32
  }
  func.func @transform_6(%arg0: i32, %arg1: i32) -> (i32, i32, i32) {
    %c0_i32 = arith.constant 0 : i32
    %c0_i32_0 = arith.constant 0 : i32
    %c0_i32_1 = arith.constant 0 : i32
    return %arg1, %c0_i32, %c0_i32_0 : i32, i32, i32
  }
  func.func @transform_7(%arg0: i32, %arg1: i32) -> (i32, i32, i32) {
    %c0_i32 = arith.constant 0 : i32
    %c0_i32_0 = arith.constant 0 : i32
    %c0_i32_1 = arith.constant 0 : i32
    return %arg0, %c0_i32, %c0_i32_0 : i32, i32, i32
  }
}

</mosaic_0001>

<bundles_post_ra>
// kernel: mlp_mixer_pallas.2
= control target key start
LH: loop header
LB: loop body
LE: loop exit
PB: predicated region body
PF: predicated region fallthrough
CT: control target
= control target key end

     0   :  { %s1622_s24 = smov 0   ;;  %s1624_s25 = smov 0   ;;  %s1982_s0 = inlined_call_operand.vmem [shape: f32[2,128,128], index: 0, kind: input, shape index: {}]   ;;  %s1983_s1 = inlined_call_operand.vmem [shape: f32[1,128], index: 1, kind: input, shape index: {}]   ;;  %s1984_s2 = inlined_call_operand.vmem [shape: f32[1,128], index: 2, kind: input, shape index: {}]   ;;  %s1985_s3 = inlined_call_operand.vmem [shape: bf16[2,128,128], index: 3, kind: input, shape index: {}]   ;;  %s1986_s4 = inlined_call_operand.vmem [shape: f32[2,1,128], index: 4, kind: input, shape index: {}]   ;;  %s1987_s5 = inlined_call_operand.vmem [shape: bf16[2,128,128], index: 5, kind: input, shape index: {}]   ;;  %s1988_s6 = inlined_call_operand.vmem [shape: f32[2,1,128], index: 6, kind: input, shape index: {}]   ;;  %s1989_s7 = inlined_call_operand.vmem [shape: f32[2,128,128], index: 7, kind: output, shape index: {}]  }
   0x1   :  { %1990 = sst [smem:[#allocation4_spill]] %s1982_s0  ;;  %s1626_s26 = smov 0  }
   0x2   :  { %s1628_s27 = smov 0   ;;  %s1630_s28 = smov 0  }
   0x3 LB: > { %s26_s29 = sadd.s32 1, %s1571_s26  ;;  %s29_s30 = sadd.s32 1, %s1575_s27  ;;  %s1579_s28 = sphi %s1630_s28, %s17_s28   ;;  %s1575_s27 = sphi %s1628_s27, %s1997_s27   ;;  %s1571_s26 = sphi %s1626_s26, %s1996_s26   ;;  %s1567_s25 = sphi %s1624_s25, %s1995_s25   ;;  %s1563_s24 = sphi %s1622_s24, %s1994_s24  }
   0x4   : > { %p27_p0 = scmp.ge.s32.totalorder %s26_s29, 2  ;;  %p1350_p1 = scmp.ge.s32.totalorder %s1579_s28, 1 }
   0x5   : > { %p285_p2 = scmp.lt.s32.totalorder %s1579_s28, 5 }
   0x6   : > { %s1999_s29 = smov (%p27_p0, %s26_s29), 0  ;;  %s2001_s30 = smov (!%p27_p0, %s29_s30), %s1575_s27 }
   0x7   : > { %p286_p3 = pnand %p1350_p1, %p285_p2  ;;  %p31_p4 = scmp.ge.s32.totalorder %s2001_s30, 2 }
   0x8   : > { %p333_p5 = scmp.lt.s32.totalorder (!%p286_p3), %s1567_s25, 1  ;;  %p338_p6 = scmp.lt.s32.totalorder (!%p286_p3), %s1563_s24, 1 }
   0x9   : > { %s2003_s30 = smov (%p31_p4, %s2001_s30), 0  ;;  %289 = sbr.rel (%p286_p3) target bundleno = 1235 (0x4d3), region = 48 }
   0xa   : > { %1991 = sst [smem:[#allocation3_spill]] %s2003_s30  ;;  %p1359_p7 = scmp.ne.s32.totalorder (!%p286_p3), %s1563_s24, 0 }
   0xb   : > { %s1992_s0 = sld [smem:[#allocation4_spill]] (!%p286_p3) }
   0xe   : > { %s2005_s25 = smov (!%p333_p5, %s1567_s25), 1 }
   0xf   : > { %s1656_s8 = scalar_select %p338_p6, %s1563_s24, 1 }
  0x10   : > { %s1428_s9 = sshll.u32 %s2005_s25, 7  ;;  %362 = sbr.rel (%p1359_p7) target bundleno = 578 (0x242), region = 52 }
  0x11   : > { %s1661_s12 = scalar_lea.vmem %s1992_s0, %s1428_s9  ;;  %s1429_s13 = sshll.u32 %s1656_s8, 6 }
  0x12   : > { %s1667_s16 = scalar_lea.vmem %s1985_s3, %s1429_s13  ;;  %s345_s19 = scalar_lea.vmem %s1986_s4, %s1656_s8 }
  0x13   : > { %s1676_s22 = scalar_lea.vmem %s1987_s5, %s1429_s13  ;;  %s353_s10 = scalar_lea.vmem %s1988_s6, %s1656_s8 }
  0x14   : > { %s1685_s30 = scalar_lea.vmem %s1989_s7, %s1428_s9 }
  0x15   : > { %v363_v0 = vld [vmem:[%s1661_s12] sm:$0xff]  ;;  %v364_v1 = vld [vmem:[%s1661_s12 + $0x8] sm:$0xff]  ;;  %v365_v2 = vld [vmem:[%s1661_s12 + $0x10] sm:$0xff]  ;;  %v413_v16 = vlaneseq  ;;  %v1581_v18 = vmov 0.0  }
  0x16   : > { %379 = vxpose.xlu0.b32.start [1/16] %v363_v0, 128  ;;  %v366_v3 = vld [vmem:[%s1661_s12 + $0x18] sm:$0xff]  ;;  %v367_v4 = vld [vmem:[%s1661_s12 + $0x20] sm:$0xff]  ;;  %v368_v5 = vld [vmem:[%s1661_s12 + $0x28] sm:$0xff] }
  0x17   : > { %v369_v6 = vld [vmem:[%s1661_s12 + $0x30] sm:$0xff]  ;;  %v370_v7 = vld [vmem:[%s1661_s12 + $0x38] sm:$0xff]  ;;  %v371_v8 = vld [vmem:[%s1661_s12 + $0x40] sm:$0xff]  ;;  %v414_v17 = vand.u32 127, %v413_v16 }
  0x18   : > { %v372_v9 = vld [vmem:[%s1661_s12 + $0x48] sm:$0xff]  ;;  %v373_v10 = vld [vmem:[%s1661_s12 + $0x50] sm:$0xff]  ;;  %v374_v11 = vld [vmem:[%s1661_s12 + $0x58] sm:$0xff] }
  0x19   : > { %v375_v12 = vld [vmem:[%s1661_s12 + $0x60] sm:$0xff]  ;;  %v376_v13 = vld [vmem:[%s1661_s12 + $0x68] sm:$0xff]  ;;  %v377_v14 = vld [vmem:[%s1661_s12 + $0x70] sm:$0xff]  ;;  %vm415_vm0 = vcmp.lt.s32.totalorder %v414_v17, 16 }
  0x1a   : > { %v378_v15 = vld [vmem:[%s1661_s12 + $0x78] sm:$0xff]  ;;  %v1704_v19 = vsel %vm415_vm0, 1.0, %v1581_v18 }
  0x1e   : > { %380 = vxpose.xlu0.b32.cont [2/16] %v364_v1, 128 }
  0x26   : > { %381 = vxpose.xlu0.b32.cont [3/16] %v365_v2, 128 }
  0x2e   : > { %382 = vxpose.xlu0.b32.cont [4/16] %v366_v3, 128 }
  0x36   : > { %383 = vxpose.xlu0.b32.cont [5/16] %v367_v4, 128 }
  0x3e   : > { %384 = vxpose.xlu0.b32.cont [6/16] %v368_v5, 128 }
  0x46   : > { %385 = vxpose.xlu0.b32.cont [7/16] %v369_v6, 128 }
  0x4e   : > { %386 = vxpose.xlu0.b32.cont [8/16] %v370_v7, 128 }
  0x56   : > { %387 = vxpose.xlu0.b32.cont [9/16] %v371_v8, 128 }
  0x5e   : > { %388 = vxpose.xlu0.b32.cont [10/16] %v372_v9, 128 }
  0x66   : > { %389 = vxpose.xlu0.b32.cont [11/16] %v373_v10, 128 }
  0x6e   : > { %390 = vxpose.xlu0.b32.cont [12/16] %v374_v11, 128 }
  0x76   : > { %391 = vxpose.xlu0.b32.cont [13/16] %v375_v12, 128 }
  0x7e   : > { %392 = vxpose.xlu0.b32.cont [14/16] %v376_v13, 128 }
  0x86   : > { %393 = vxpose.xlu0.b32.cont [15/16] %v377_v14, 128 }
  0x8e   : > { %394 = vxpose.xlu0.b32.end [16/16] %v378_v15, 128 }
  0xba   : > { %v395_v20 = vpop.trf.xlu0 }
  0xbb   : > { %v418_v21 = vmul.f32 %v1704_v19, %v395_v20 }
  0xbd   : > { %434 = vadd.xlane.f32.xlu1 %v418_v21 }
  0xc2   : > { %v396_v22 = vpop.trf.xlu0 }
  0xc3   : > { %v419_v23 = vmul.f32 %v1704_v19, %v396_v22 }
  0xc5   : > { %436 = vadd.xlane.f32.xlu1 %v419_v23 }
  0xca   : > { %v397_v24 = vpop.trf.xlu0 }
  0xcb   : > { %v420_v25 = vmul.f32 %v1704_v19, %v397_v24 }
  0xcd   : > { %438 = vadd.xlane.f32.xlu2 %v420_v25 }
  0xd2   : > { %v398_v26 = vpop.trf.xlu0 }
  0xd3   : > { %v421_v27 = vmul.f32 %v1704_v19, %v398_v26 }
  0xd5   : > { %440 = vadd.xlane.f32.xlu2 %v421_v27 }
  0xda   : > { %v1710_v28 = vpop.trf.xlu0 }
  0xdb   : > { %v422_v29 = vmul.f32 %v1704_v19, %v1710_v28 }
  0xdd   : > { %442 = vadd.xlane.f32.xlu1 %v422_v29 }
  0xe2   : > { %v1714_v30 = vpop.trf.xlu0 }
  0xe3   : > { %v423_v31 = vmul.f32 %v1704_v19, %v1714_v30 }
  0xe5   : > { %444 = vadd.xlane.f32.xlu2 %v423_v31 }
  0xea   : > { %v1718_v32 = vpop.trf.xlu0 }
  0xeb   : > { %v424_v33 = vmul.f32 %v1704_v19, %v1718_v32 }
  0xed   : > { %446 = vadd.xlane.f32.xlu1 %v424_v33 }
  0xf2   : > { %v1722_v34 = vpop.trf.xlu0 }
  0xf3   : > { %v425_v35 = vmul.f32 %v1704_v19, %v1722_v34 }
  0xf5   : > { %448 = vadd.xlane.f32.xlu2 %v425_v35 }
  0xfa   : > { %v1726_v36 = vpop.trf.xlu0 }
  0xfb   : > { %v426_v37 = vmul.f32 %v1704_v19, %v1726_v36 }
  0xfd   : > { %450 = vadd.xlane.f32.xlu1 %v426_v37 }
 0x102   : > { %v1730_v38 = vpop.trf.xlu0 }
 0x103   : > { %v427_v39 = vmul.f32 %v1704_v19, %v1730_v38 }
 0x105   : > { %452 = vadd.xlane.f32.xlu2 %v427_v39 }
 0x10a   : > { %v1734_v40 = vpop.trf.xlu0 }
 0x10b   : > { %v428_v41 = vmul.f32 %v1704_v19, %v1734_v40 }
 0x10d   : > { %454 = vadd.xlane.f32.xlu1 %v428_v41 }
 0x112   : > { %v1738_v42 = vpop.trf.xlu0 }
 0x113   : > { %v429_v43 = vmul.f32 %v1704_v19, %v1738_v42 }
 0x115   : > { %456 = vadd.xlane.f32.xlu2 %v429_v43 }
 0x11a   : > { %v1742_v44 = vpop.trf.xlu0 }
 0x11b   : > { %v430_v45 = vmul.f32 %v1704_v19, %v1742_v44 }
 0x11d   : > { %458 = vadd.xlane.f32.xlu1 %v430_v45 }
 0x122   : > { %v1746_v46 = vpop.trf.xlu0 }
 0x123   : > { %v431_v47 = vmul.f32 %v1704_v19, %v1746_v46 }
 0x125   : > { %460 = vadd.xlane.f32.xlu2 %v431_v47 }
 0x12a   : > { %v1750_v48 = vpop.trf.xlu0 }
 0x12b   : > { %v432_v49 = vmul.f32 %v1704_v19, %v1750_v48 }
 0x12d   : > { %462 = vadd.xlane.f32.xlu1 %v432_v49 }
 0x130   : > { %v435_v50 = vpop.xlane.xlu1 %434 }
 0x131   : > { %v466_v51 = vmul.f32 0.0625, %v435_v50 }
 0x132   : > { %v1754_v52 = vpop.trf.xlu0 }
 0x133   : > { %v482_v53 = vsub.f32 %v395_v20, %v466_v51  ;;  %v433_v54 = vmul.f32 %v1704_v19, %v1754_v52 }
 0x135   : > { %464 = vadd.xlane.f32.xlu2 %v433_v54  ;;  %v1759_v55 = vmul.f32 %v1704_v19, %v482_v53 }
 0x137   : > { %v514_v56 = vmul.f32 %v1759_v55, %v1759_v55 }
 0x138   : > { %v437_v57 = vpop.xlane.xlu1 %436 }
 0x139   : > { %v467_v58 = vmul.f32 0.0625, %v437_v57  ;;  %530 = vadd.xlane.f32.xlu1 %v514_v56 }
 0x13b   : > { %v483_v59 = vsub.f32 %v396_v22, %v467_v58 }
 0x13d   : > { %v1764_v60 = vmul.f32 %v1704_v19, %v483_v59 }
 0x13f   : > { %v515_v61 = vmul.f32 %v1764_v60, %v1764_v60 }
 0x140   : > { %v439_v62 = vpop.xlane.xlu2 %438 }
 0x141   : > { %v468_v63 = vmul.f32 0.0625, %v439_v62  ;;  %532 = vadd.xlane.f32.xlu2 %v515_v61 }
 0x143   : > { %v484_v0 = vsub.f32 %v397_v24, %v468_v63 }
 0x145   : > { %v1769_v1 = vmul.f32 %v1704_v19, %v484_v0 }
 0x147   : > { %v516_v2 = vmul.f32 %v1769_v1, %v1769_v1 }
 0x148   : > { %v441_v3 = vpop.xlane.xlu2 %440 }
 0x149   : > { %v469_v4 = vmul.f32 0.0625, %v441_v3  ;;  %534 = vadd.xlane.f32.xlu1 %v516_v2 }
 0x14b   : > { %v485_v5 = vsub.f32 %v398_v26, %v469_v4 }
 0x14d   : > { %v1774_v6 = vmul.f32 %v1704_v19, %v485_v5 }
 0x14f   : > { %v517_v7 = vmul.f32 %v1774_v6, %v1774_v6 }
 0x150   : > { %v443_v8 = vpop.xlane.xlu1 %442 }
 0x151   : > { %v470_v9 = vmul.f32 0.0625, %v443_v8  ;;  %536 = vadd.xlane.f32.xlu2 %v517_v7 }
 0x153   : > { %v486_v10 = vsub.f32 %v1710_v28, %v470_v9 }
 0x155   : > { %v1780_v11 = vmul.f32 %v1704_v19, %v486_v10 }
 0x157   : > { %v518_v12 = vmul.f32 %v1780_v11, %v1780_v11 }
 0x158   : > { %v445_v13 = vpop.xlane.xlu2 %444 }
 0x159   : > { %v471_v14 = vmul.f32 0.0625, %v445_v13  ;;  %538 = vadd.xlane.f32.xlu1 %v518_v12 }
 0x15b   : > { %v487_v15 = vsub.f32 %v1714_v30, %v471_v14 }
 0x15d   : > { %v1786_v16 = vmul.f32 %v1704_v19, %v487_v15 }
 0x15f   : > { %v519_v17 = vmul.f32 %v1786_v16, %v1786_v16 }
 0x160   : > { %v447_v18 = vpop.xlane.xlu1 %446 }
 0x161   : > { %v472_v20 = vmul.f32 0.0625, %v447_v18  ;;  %540 = vadd.xlane.f32.xlu2 %v519_v17 }
 0x163   : > { %v488_v21 = vsub.f32 %v1718_v32, %v472_v20 }
 0x165   : > { %v1792_v22 = vmul.f32 %v1704_v19, %v488_v21 }
 0x167   : > { %v520_v23 = vmul.f32 %v1792_v22, %v1792_v22 }
 0x168   : > { %v449_v24 = vpop.xlane.xlu2 %448 }
 0x169   : > { %v473_v25 = vmul.f32 0.0625, %v449_v24  ;;  %542 = vadd.xlane.f32.xlu1 %v520_v23 }
 0x16b   : > { %v489_v26 = vsub.f32 %v1722_v34, %v473_v25 }
 0x16d   : > { %v1798_v27 = vmul.f32 %v1704_v19, %v489_v26 }
 0x16f   : > { %v521_v28 = vmul.f32 %v1798_v27, %v1798_v27 }
 0x170   : > { %v451_v29 = vpop.xlane.xlu1 %450 }
 0x171   : > { %v474_v30 = vmul.f32 0.0625, %v451_v29  ;;  %544 = vadd.xlane.f32.xlu2 %v521_v28 }
 0x173   : > { %v490_v31 = vsub.f32 %v1726_v36, %v474_v30  ;;  %v1853_v30 = vld [vmem:[%s1983_s1] ss:$0 sm:$0xff] }
 0x175   : > { %v1804_v32 = vmul.f32 %v1704_v19, %v490_v31 }
 0x177   : > { %v522_v33 = vmul.f32 %v1804_v32, %v1804_v32 }
 0x178   : > { %v453_v35 = vpop.xlane.xlu2 %452 }
 0x179   : > { %v475_v37 = vmul.f32 0.0625, %v453_v35  ;;  %546 = vadd.xlane.f32.xlu1 %v522_v33  ;;  %v1858_v35 = vld [vmem:[%s1984_s2] ss:$0 sm:$0xff] }
 0x17b   : > { %v491_v34 = vsub.f32 %v1730_v38, %v475_v37 }
 0x17d   : > { %v1810_v39 = vmul.f32 %v1704_v19, %v491_v34 }
 0x17f   : > { %v523_v41 = vmul.f32 %v1810_v39, %v1810_v39 }
 0x180   : > { %v455_v43 = vpop.xlane.xlu1 %454 }
 0x181   : > { %v476_v45 = vmul.f32 0.0625, %v455_v43  ;;  %548 = vadd.xlane.f32.xlu2 %v523_v41 }
 0x183   : > { %v492_v36 = vsub.f32 %v1734_v40, %v476_v45 }
 0x185   : > { %v1816_v47 = vmul.f32 %v1704_v19, %v492_v36 }
 0x187   : > { %v524_v49 = vmul.f32 %v1816_v47, %v1816_v47 }
 0x188   : > { %v457_v50 = vpop.xlane.xlu2 %456 }
 0x189   : > { %v477_v51 = vmul.f32 0.0625, %v457_v50  ;;  %550 = vadd.xlane.f32.xlu1 %v524_v49 }
 0x18b   : > { %v493_v38 = vsub.f32 %v1738_v42, %v477_v51 }
 0x18d   : > { %v1822_v53 = vmul.f32 %v1704_v19, %v493_v38 }
 0x18f   : > { %v525_v54 = vmul.f32 %v1822_v53, %v1822_v53 }
 0x190   : > { %v459_v56 = vpop.xlane.xlu1 %458 }
 0x191   : > { %v478_v57 = vmul.f32 0.0625, %v459_v56  ;;  %552 = vadd.xlane.f32.xlu2 %v525_v54 }
 0x193   : > { %v494_v40 = vsub.f32 %v1742_v44, %v478_v57 }
 0x195   : > { %v1828_v58 = vmul.f32 %v1704_v19, %v494_v40 }
 0x197   : > { %v526_v59 = vmul.f32 %v1828_v58, %v1828_v58 }
 0x198   : > { %v461_v61 = vpop.xlane.xlu2 %460 }
 0x199   : > { %v479_v62 = vmul.f32 0.0625, %v461_v61  ;;  %554 = vadd.xlane.f32.xlu1 %v526_v59 }
 0x19b   : > { %v495_v42 = vsub.f32 %v1746_v46, %v479_v62 }
 0x19d   : > { %v1834_v63 = vmul.f32 %v1704_v19, %v495_v42 }
 0x19f   : > { %v527_v0 = vmul.f32 %v1834_v63, %v1834_v63 }
 0x1a0   : > { %v463_v2 = vpop.xlane.xlu1 %462 }
 0x1a1   : > { %v480_v3 = vmul.f32 0.0625, %v463_v2  ;;  %556 = vadd.xlane.f32.xlu2 %v527_v0 }
 0x1a3   : > { %v496_v44 = vsub.f32 %v1750_v48, %v480_v3 }
 0x1a5   : > { %v1840_v4 = vmul.f32 %v1704_v19, %v496_v44 }
 0x1a7   : > { %v528_v5 = vmul.f32 %v1840_v4, %v1840_v4 }
 0x1a8   : > { %v465_v7 = vpop.xlane.xlu2 %464 }
 0x1a9   : > { %v481_v8 = vmul.f32 0.0625, %v465_v7  ;;  %558 = vadd.xlane.f32.xlu1 %v528_v5 }
 0x1ab   : > { %v497_v46 = vsub.f32 %v1754_v52, %v481_v8 }
 0x1ac   : > { %v531_v9 = vpop.xlane.xlu1 %530 }
 0x1ad   : > { %v562_v10 = vmul.f32 0.0625, %v531_v9  ;;  %v1846_v12 = vmul.f32 %v1704_v19, %v497_v46 }
 0x1af   : > { %v578_v13 = vadd.f32 1e-05, %v562_v10  ;;  %v529_v48 = vmul.f32 %v1846_v12, %v1846_v12 }
 0x1b1   : > { %1507 = vrsqrt.f32 %v578_v13  ;;  %560 = vadd.xlane.f32.xlu2 %v529_v48  ;;  %vm600_vm2 = vweird.f32 %v578_v13 }
 0x1b4   : > { %v533_v14 = vpop.xlane.xlu2 %532 }
 0x1b5   : > { %v563_v15 = vmul.f32 0.0625, %v533_v14 }
 0x1b7   : > { %v1508_v17 = vpop.eup %1507  ;;  %v579_v18 = vadd.f32 1e-05, %v563_v15 }
 0x1b8   : > { %v595_v20 = vmul.f32 %v1508_v17, %v578_v13  ;;  %vm601_vm1 = vweird.f32 %v1508_v17 }
 0x1b9   : > { %1509 = vrsqrt.f32 %v579_v18  ;;  %vm602_vm3 = vmor %vm600_vm2, %vm601_vm1  ;;  %vm610_vm5 = vweird.f32 %v579_v18 }
 0x1ba   : > { %v596_v21 = vmul.f32 %v1508_v17, %v595_v20 }
 0x1bc   : > { %v597_v23 = vmul.f32 0.5, %v596_v21  ;;  %v535_v52 = vpop.xlane.xlu1 %534 }
 0x1bd   : > { %v564_v24 = vmul.f32 0.0625, %v535_v52 }
 0x1be   : > { %v598_v25 = vsub.f32 1.5, %v597_v23 }
 0x1bf   : > { %v1510_v19 = vpop.eup %1509  ;;  %v580_v26 = vadd.f32 1e-05, %v564_v24 }
 0x1c0   : > { %v599_v28 = vmul.f32 %v1508_v17, %v598_v25  ;;  %v605_v29 = vmul.f32 %v1510_v19, %v579_v18  ;;  %vm611_vm4 = vweird.f32 %v1510_v19 }
 0x1c1   : > { %1511 = vrsqrt.f32 %v580_v26  ;;  %vm612_vm6 = vmor %vm610_vm5, %vm611_vm4  ;;  %vm620_vm8 = vweird.f32 %v580_v26 }
 0x1c2   : > { %v603_v31 = vsel %vm602_vm3, %v1508_v17, %v599_v28  ;;  %v606_v33 = vmul.f32 %v1510_v19, %v605_v29 }
 0x1c3   : > { %v754_v37 = vmul.f32 %v603_v31, %v1759_v55 }
 0x1c4   : > { %v607_v34 = vmul.f32 0.5, %v606_v33  ;;  %v537_v41 = vpop.xlane.xlu2 %536 }
 0x1c5   : > { %v773_v43 = vmul.f32 %v1853_v30, %v754_v37  ;;  %v565_v45 = vmul.f32 0.0625, %v537_v41 }
 0x1c6   : > { %v608_v36 = vsub.f32 1.5, %v607_v34 }
 0x1c7   : > { %v1512_v49 = vpop.eup %1511  ;;  %v792_v50 = vadd.f32 %v1858_v35, %v773_v43  ;;  %v581_v51 = vadd.f32 1e-05, %v565_v45 }
 0x1c8   : > { %v609_v38 = vmul.f32 %v1510_v19, %v608_v36  ;;  %v615_v54 = vmul.f32 %v1512_v49, %v580_v26  ;;  %vm621_vm7 = vweird.f32 %v1512_v49 }
 0x1c9   : > { %808 = vst [vmem:[#allocation2 + $0x30] sm:$0xff] %v792_v50  ;;  %1513 = vrsqrt.f32 %v581_v51  ;;  %vm622_vm9 = vmor %vm620_vm8, %vm621_vm7  ;;  %vm630_vm11 = vweird.f32 %v581_v51 }
 0x1ca   : > { %v613_v56 = vsel %vm612_vm6, %v1510_v19, %v609_v38  ;;  %v616_v57 = vmul.f32 %v1512_v49, %v615_v54 }
 0x1cb   : > { %v755_v55 = vmul.f32 %v613_v56, %v1764_v60 }
 0x1cc   : > { %v617_v40 = vmul.f32 0.5, %v616_v57  ;;  %v539_v59 = vpop.xlane.xlu1 %538 }
 0x1cd   : > { %v774_v61 = vmul.f32 %v1853_v30, %v755_v55  ;;  %v566_v62 = vmul.f32 0.0625, %v539_v59 }
 0x1ce   : > { %v618_v42 = vsub.f32 1.5, %v617_v40 }
 0x1cf   : > { %v1514_v0 = vpop.eup %1513  ;;  %v793_v2 = vadd.f32 %v1858_v35, %v774_v61  ;;  %v582_v3 = vadd.f32 1e-05, %v566_v62 }
 0x1d0   : > { %v619_v44 = vmul.f32 %v1512_v49, %v618_v42  ;;  %v625_v5 = vmul.f32 %v1514_v0, %v581_v51  ;;  %vm631_vm10 = vweird.f32 %v1514_v0 }
 0x1d1   : > { %809 = vst [vmem:[#allocation2] sm:$0xff] %v793_v2  ;;  %1515 = vrsqrt.f32 %v582_v3  ;;  %vm632_vm12 = vmor %vm630_vm11, %vm631_vm10  ;;  %vm640_vm14 = vweird.f32 %v582_v3 }
 0x1d2   : > { %v623_v7 = vsel %vm622_vm9, %v1512_v49, %v619_v44  ;;  %v626_v8 = vmul.f32 %v1514_v0, %v625_v5 }
 0x1d3   : > { %v756_v60 = vmul.f32 %v623_v7, %v1769_v1 }
 0x1d4   : > { %v627_v46 = vmul.f32 0.5, %v626_v8  ;;  %v541_v9 = vpop.xlane.xlu2 %540 }
 0x1d5   : > { %v775_v10 = vmul.f32 %v1853_v30, %v756_v60  ;;  %v567_v13 = vmul.f32 0.0625, %v541_v9 }
 0x1d6   : > { %v628_v48 = vsub.f32 1.5, %v627_v46 }
 0x1d7   : > { %v1516_v14 = vpop.eup %1515  ;;  %v794_v15 = vadd.f32 %v1858_v35, %v775_v10  ;;  %v583_v17 = vadd.f32 1e-05, %v567_v13 }
 0x1d8   : > { %v629_v18 = vmul.f32 %v1514_v0, %v628_v48  ;;  %v635_v20 = vmul.f32 %v1516_v14, %v582_v3  ;;  %vm641_vm13 = vweird.f32 %v1516_v14 }
 0x1d9   : > { %810 = vst [vmem:[#allocation2 + $0x58] sm:$0xff] %v794_v15  ;;  %1517 = vrsqrt.f32 %v583_v17  ;;  %vm642_vm15 = vmor %vm640_vm14, %vm641_vm13  ;;  %vm650_vm1 = vweird.f32 %v583_v17 }
 0x1da   : > { %v633_v21 = vsel %vm632_vm12, %v1514_v0, %v629_v18  ;;  %v636_v23 = vmul.f32 %v1516_v14, %v635_v20 }
 0x1db   : > { %v757_v1 = vmul.f32 %v633_v21, %v1774_v6 }
 0x1dc   : > { %v637_v52 = vmul.f32 0.5, %v636_v23  ;;  %v543_v24 = vpop.xlane.xlu1 %542 }
 0x1dd   : > { %v776_v25 = vmul.f32 %v1853_v30, %v757_v1  ;;  %v568_v19 = vmul.f32 0.0625, %v543_v24 }
 0x1de   : > { %v638_v26 = vsub.f32 1.5, %v637_v52 }
 0x1df   : > { %v1518_v28 = vpop.eup %1517  ;;  %v795_v29 = vadd.f32 %v1858_v35, %v776_v25  ;;  %v584_v31 = vadd.f32 1e-05, %v568_v19 }
 0x1e0   : > { %v639_v33 = vmul.f32 %v1516_v14, %v638_v26  ;;  %v645_v37 = vmul.f32 %v1518_v28, %v583_v17  ;;  %vm651_vm0 = vweird.f32 %v1518_v28 }
 0x1e1   : > { %811 = vst [vmem:[#allocation2 + $0x18] sm:$0xff] %v795_v29  ;;  %1519 = vrsqrt.f32 %v584_v31  ;;  %vm652_vm2 = vmor %vm650_vm1, %vm651_vm0  ;;  %vm660_vm4 = vweird.f32 %v584_v31 }
 0x1e2   : > { %v643_v34 = vsel %vm642_vm15, %v1516_v14, %v639_v33  ;;  %v646_v41 = vmul.f32 %v1518_v28, %v645_v37 }
 0x1e3   : > { %v758_v6 = vmul.f32 %v643_v34, %v1780_v11 }
 0x1e4   : > { %v647_v43 = vmul.f32 0.5, %v646_v41  ;;  %v545_v45 = vpop.xlane.xlu2 %544 }
 0x1e5   : > { %v777_v36 = vmul.f32 %v1853_v30, %v758_v6  ;;  %v569_v49 = vmul.f32 0.0625, %v545_v45 }
 0x1e6   : > { %v648_v50 = vsub.f32 1.5, %v647_v43 }
 0x1e7   : > { %v1520_v51 = vpop.eup %1519  ;;  %v796_v38 = vadd.f32 %v1858_v35, %v777_v36  ;;  %v585_v54 = vadd.f32 1e-05, %v569_v49 }
 0x1e8   : > { %v649_v56 = vmul.f32 %v1518_v28, %v648_v50  ;;  %v655_v57 = vmul.f32 %v1520_v51, %v584_v31  ;;  %vm661_vm3 = vweird.f32 %v1520_v51 }
 0x1e9   : > { %812 = vst [vmem:[#allocation2 + $0x50] sm:$0xff] %v796_v38  ;;  %1521 = vrsqrt.f32 %v585_v54  ;;  %vm662_vm5 = vmor %vm660_vm4, %vm661_vm3  ;;  %vm670_vm7 = vweird.f32 %v585_v54 }
 0x1ea   : > { %v653_v55 = vsel %vm652_vm2, %v1518_v28, %v649_v56  ;;  %v656_v40 = vmul.f32 %v1520_v51, %v655_v57 }
 0x1eb   : > { %v759_v11 = vmul.f32 %v653_v55, %v1786_v16 }
 0x1ec   : > { %v657_v59 = vmul.f32 0.5, %v656_v40  ;;  %v547_v61 = vpop.xlane.xlu1 %546 }
 0x1ed   : > { %v778_v62 = vmul.f32 %v1853_v30, %v759_v11  ;;  %v570_v42 = vmul.f32 0.0625, %v547_v61 }
 0x1ee   : > { %v658_v0 = vsub.f32 1.5, %v657_v59 }
 0x1ef   : > { %v1522_v2 = vpop.eup %1521  ;;  %v797_v3 = vadd.f32 %v1858_v35, %v778_v62  ;;  %v586_v44 = vadd.f32 1e-05, %v570_v42 }
 0x1f0   : > { %v659_v5 = vmul.f32 %v1520_v51, %v658_v0  ;;  %v665_v7 = vmul.f32 %v1522_v2, %v585_v54  ;;  %vm671_vm6 = vweird.f32 %v1522_v2 }
 0x1f1   : > { %813 = vst [vmem:[#allocation2 + $0x68] sm:$0xff] %v797_v3  ;;  %1523 = vrsqrt.f32 %v586_v44  ;;  %vm672_vm8 = vmor %vm670_vm7, %vm671_vm6  ;;  %vm680_vm10 = vweird.f32 %v586_v44 }
 0x1f2   : > { %v663_v8 = vsel %vm662_vm5, %v1520_v51, %v659_v5  ;;  %v666_v60 = vmul.f32 %v1522_v2, %v665_v7 }
 0x1f3   : > { %v760_v16 = vmul.f32 %v663_v8, %v1792_v22 }
 0x1f4   : > { %v667_v46 = vmul.f32 0.5, %v666_v60  ;;  %v549_v9 = vpop.xlane.xlu2 %548 }
 0x1f5   : > { %v779_v10 = vmul.f32 %v1853_v30, %v760_v16  ;;  %v571_v13 = vmul.f32 0.0625, %v549_v9 }
 0x1f6   : > { %v668_v48 = vsub.f32 1.5, %v667_v46 }
 0x1f7   : > { %v1524_v14 = vpop.eup %1523  ;;  %v798_v15 = vadd.f32 %v1858_v35, %v779_v10  ;;  %v587_v17 = vadd.f32 1e-05, %v571_v13 }
 0x1f8   : > { %v669_v18 = vmul.f32 %v1522_v2, %v668_v48  ;;  %v675_v20 = vmul.f32 %v1524_v14, %v586_v44  ;;  %vm681_vm9 = vweird.f32 %v1524_v14 }
 0x1f9   : > { %814 = vst [vmem:[#allocation2 + $0x8] sm:$0xff] %v798_v15  ;;  %1525 = vrsqrt.f32 %v587_v17  ;;  %vm682_vm11 = vmor %vm680_vm10, %vm681_vm9  ;;  %vm690_vm13 = vweird.f32 %v587_v17 }
 0x1fa   : > { %v673_v21 = vsel %vm672_vm8, %v1522_v2, %v669_v18  ;;  %v676_v23 = vmul.f32 %v1524_v14, %v675_v20 }
 0x1fb   : > { %v761_v22 = vmul.f32 %v673_v21, %v1798_v27 }
 0x1fc   : > { %v677_v1 = vmul.f32 0.5, %v676_v23  ;;  %v551_v52 = vpop.xlane.xlu1 %550 }
 0x1fd   : > { %v780_v24 = vmul.f32 %v1853_v30, %v761_v22  ;;  %v572_v25 = vmul.f32 0.0625, %v551_v52 }
 0x1fe   : > { %v678_v19 = vsub.f32 1.5, %v677_v1 }
 0x1ff   : > { %v1526_v26 = vpop.eup %1525  ;;  %v799_v28 = vadd.f32 %v1858_v35, %v780_v24  ;;  %v588_v29 = vadd.f32 1e-05, %v572_v25 }
 0x200   : > { %v679_v31 = vmul.f32 %v1524_v14, %v678_v19  ;;  %v685_v33 = vmul.f32 %v1526_v26, %v587_v17  ;;  %vm691_vm12 = vweird.f32 %v1526_v26 }
 0x201   : > { %815 = vst [vmem:[#allocation2 + $0x48] sm:$0xff] %v799_v28  ;;  %1527 = vrsqrt.f32 %v588_v29  ;;  %vm692_vm14 = vmor %vm690_vm13, %vm691_vm12  ;;  %vm700_vm0 = vweird.f32 %v588_v29 }
 0x202   : > { %v683_v37 = vsel %vm682_vm11, %v1524_v14, %v679_v31  ;;  %v686_v34 = vmul.f32 %v1526_v26, %v685_v33 }
 0x203   : > { %v762_v27 = vmul.f32 %v683_v37, %v1804_v32 }
 0x204   : > { %v687_v41 = vmul.f32 0.5, %v686_v34  ;;  %v553_v6 = vpop.xlane.xlu2 %552 }
 0x205   : > { %v781_v43 = vmul.f32 %v1853_v30, %v762_v27  ;;  %v573_v45 = vmul.f32 0.0625, %v553_v6 }
 0x206   : > { %v688_v36 = vsub.f32 1.5, %v687_v41 }
 0x207   : > { %v1528_v49 = vpop.eup %1527  ;;  %v800_v50 = vadd.f32 %v1858_v35, %v781_v43  ;;  %v589_v51 = vadd.f32 1e-05, %v573_v45 }
 0x208   : > { %v689_v38 = vmul.f32 %v1526_v26, %v688_v36  ;;  %v695_v54 = vmul.f32 %v1528_v49, %v588_v29  ;;  %vm701_vm15 = vweird.f32 %v1528_v49 }
 0x209   : > { %816 = vst [vmem:[#allocation2 + $0x40] sm:$0xff] %v800_v50  ;;  %1529 = vrsqrt.f32 %v589_v51  ;;  %vm702_vm1 = vmor %vm700_vm0, %vm701_vm15  ;;  %vm710_vm3 = vweird.f32 %v589_v51 }
 0x20a   : > { %v693_v56 = vsel %vm692_vm14, %v1526_v26, %v689_v38  ;;  %v696_v57 = vmul.f32 %v1528_v49, %v695_v54 }
 0x20b   : > { %v763_v32 = vmul.f32 %v693_v56, %v1810_v39 }
 0x20c   : > { %v697_v55 = vmul.f32 0.5, %v696_v57  ;;  %v555_v40 = vpop.xlane.xlu1 %554 }
 0x20d   : > { %v782_v11 = vmul.f32 %v1853_v30, %v763_v32  ;;  %v574_v59 = vmul.f32 0.0625, %v555_v40 }
 0x20e   : > { %v698_v61 = vsub.f32 1.5, %v697_v55 }
 0x20f   : > { %v1530_v62 = vpop.eup %1529  ;;  %v801_v42 = vadd.f32 %v1858_v35, %v782_v11  ;;  %v590_v0 = vadd.f32 1e-05, %v574_v59 }
 0x210   : > { %v699_v2 = vmul.f32 %v1528_v49, %v698_v61  ;;  %v705_v3 = vmul.f32 %v1530_v62, %v589_v51  ;;  %vm711_vm2 = vweird.f32 %v1530_v62 }
 0x211   : > { %817 = vst [vmem:[#allocation2 + $0x20] sm:$0xff] %v801_v42  ;;  %1531 = vrsqrt.f32 %v590_v0  ;;  %vm712_vm4 = vmor %vm710_vm3, %vm711_vm2  ;;  %vm720_vm6 = vweird.f32 %v590_v0 }
 0x212   : > { %v703_v44 = vsel %vm702_vm1, %v1528_v49, %v699_v2  ;;  %v706_v5 = vmul.f32 %v1530_v62, %v705_v3 }
 0x213   : > { %v764_v39 = vmul.f32 %v703_v44, %v1816_v47 }
 0x214   : > { %v707_v7 = vmul.f32 0.5, %v706_v5  ;;  %v557_v8 = vpop.xlane.xlu2 %556 }
 0x215   : > { %v783_v60 = vmul.f32 %v1853_v30, %v764_v39  ;;  %v575_v16 = vmul.f32 0.0625, %v557_v8 }
 0x216   : > { %v708_v46 = vsub.f32 1.5, %v707_v7 }
 0x217   : > { %v1532_v9 = vpop.eup %1531  ;;  %v802_v10 = vadd.f32 %v1858_v35, %v783_v60  ;;  %v591_v13 = vadd.f32 1e-05, %v575_v16 }
 0x218   : > { %v709_v48 = vmul.f32 %v1530_v62, %v708_v46  ;;  %v715_v14 = vmul.f32 %v1532_v9, %v590_v0  ;;  %vm721_vm5 = vweird.f32 %v1532_v9 }
 0x219   : > { %818 = vst [vmem:[#allocation2 + $0x10] sm:$0xff] %v802_v10  ;;  %1533 = vrsqrt.f32 %v591_v13  ;;  %vm722_vm7 = vmor %vm720_vm6, %vm721_vm5  ;;  %vm730_vm9 = vweird.f32 %v591_v13 }
 0x21a   : > { %v713_v15 = vsel %vm712_vm4, %v1530_v62, %v709_v48  ;;  %v716_v17 = vmul.f32 %v1532_v9, %v715_v14 }
 0x21b   : > { %v765_v47 = vmul.f32 %v713_v15, %v1822_v53 }
 0x21c   : > { %v717_v18 = vmul.f32 0.5, %v716_v17  ;;  %v559_v20 = vpop.xlane.xlu1 %558 }
 0x21d   : > { %v784_v21 = vmul.f32 %v1853_v30, %v765_v47  ;;  %v576_v23 = vmul.f32 0.0625, %v559_v20 }
 0x21e   : > { %v718_v22 = vsub.f32 1.5, %v717_v18 }
 0x21f   : > { %v1534_v1 = vpop.eup %1533  ;;  %v803_v52 = vadd.f32 %v1858_v35, %v784_v21  ;;  %v592_v24 = vadd.f32 1e-05, %v576_v23 }
 0x220   : > { %v719_v25 = vmul.f32 %v1532_v9, %v718_v22  ;;  %v725_v19 = vmul.f32 %v1534_v1, %v591_v13  ;;  %vm731_vm8 = vweird.f32 %v1534_v1 }
 0x221   : > { %819 = vst [vmem:[#allocation2 + $0x38] sm:$0xff] %v803_v52  ;;  %1535 = vrsqrt.f32 %v592_v24  ;;  %vm732_vm10 = vmor %vm730_vm9, %vm731_vm8  ;;  %vm740_vm12 = vweird.f32 %v592_v24 }
 0x222   : > { %v723_v26 = vsel %vm722_vm7, %v1532_v9, %v719_v25  ;;  %v726_v28 = vmul.f32 %v1534_v1, %v725_v19 }
 0x223   : > { %v766_v53 = vmul.f32 %v723_v26, %v1828_v58 }
 0x224   : > { %v727_v29 = vmul.f32 0.5, %v726_v28  ;;  %v561_v31 = vpop.xlane.xlu2 %560 }
 0x225   : > { %v785_v33 = vmul.f32 %v1853_v30, %v766_v53  ;;  %v577_v37 = vmul.f32 0.0625, %v561_v31 }
 0x226   : > { %v728_v34 = vsub.f32 1.5, %v727_v29 }
 0x227   : > { %v1536_v27 = vpop.eup %1535  ;;  %v804_v41 = vadd.f32 %v1858_v35, %v785_v33  ;;  %v593_v6 = vadd.f32 1e-05, %v577_v37 }
 0x228   : > { %v729_v43 = vmul.f32 %v1534_v1, %v728_v34  ;;  %v735_v45 = vmul.f32 %v1536_v27, %v592_v24  ;;  %vm741_vm11 = vweird.f32 %v1536_v27 }
 0x229   : > { %820 = vst [vmem:[#allocation2 + $0x60] sm:$0xff] %v804_v41  ;;  %1537 = vrsqrt.f32 %v593_v6  ;;  %vm742_vm13 = vmor %vm740_vm12, %vm741_vm11  ;;  %vm750_vm15 = vweird.f32 %v593_v6 }
 0x22a   : > { %v733_v36 = vsel %vm732_vm10, %v1534_v1, %v729_v43  ;;  %v736_v49 = vmul.f32 %v1536_v27, %v735_v45 }
 0x22b   : > { %v767_v58 = vmul.f32 %v733_v36, %v1834_v63 }
 0x22c   : > { %v737_v50 = vmul.f32 0.5, %v736_v49 }
 0x22d   : > { %v786_v51 = vmul.f32 %v1853_v30, %v767_v58 }
 0x22e   : > { %v738_v38 = vsub.f32 1.5, %v737_v50 }
 0x22f   : > { %v1538_v54 = vpop.eup %1537  ;;  %v805_v56 = vadd.f32 %v1858_v35, %v786_v51 }
 0x230   : > { %v739_v57 = vmul.f32 %v1536_v27, %v738_v38  ;;  %v745_v32 = vmul.f32 %v1538_v54, %v593_v6  ;;  %vm751_vm14 = vweird.f32 %v1538_v54 }
 0x231   : > { %821 = vst [vmem:[#allocation2 + $0x70] sm:$0xff] %v805_v56  ;;  %vm752_vm0 = vmor %vm750_vm15, %vm751_vm14 }
 0x232   : > { %v743_v55 = vsel %vm742_vm13, %v1536_v27, %v739_v57  ;;  %v746_v40 = vmul.f32 %v1538_v54, %v745_v32 }
 0x233   : > { %v768_v11 = vmul.f32 %v743_v55, %v1840_v4 }
 0x234   : > { %v747_v59 = vmul.f32 0.5, %v746_v40 }
 0x235   : > { %v787_v63 = vmul.f32 %v1853_v30, %v768_v11 }
 0x236   : > { %v748_v61 = vsub.f32 1.5, %v747_v59 }
 0x237   : > { %v806_v62 = vadd.f32 %v1858_v35, %v787_v63 }
 0x238   : > { %v749_v42 = vmul.f32 %v1538_v54, %v748_v61 }
 0x239   : > { %822 = vst [vmem:[#allocation2 + $0x78] sm:$0xff] %v806_v62 }
 0x23a   : > { %v753_v0 = vsel %vm752_vm0, %v1538_v54, %v749_v42 }
 0x23b   : > { %v769_v2 = vmul.f32 %v753_v0, %v1846_v12 }
 0x23d   : > { %v788_v3 = vmul.f32 %v1853_v30, %v769_v2 }
 0x23f   : > { %v807_v44 = vadd.f32 %v1858_v35, %v788_v3 }
 0x241   : > { %823 = vst [vmem:[#allocation2 + $0x28] sm:$0xff] %v807_v44 }
 0x242 PF: > { %v1439_v4 = vld [vmem:[%s1667_s16 + $0x38] sm:$0xff]  ;;  %v1438_v5 = vld [vmem:[%s1667_s16 + $0x30] sm:$0xff]  ;;  %v1437_v12 = vld [vmem:[%s1667_s16 + $0x28] sm:$0xff]  ;;  %p1425_p8 = scmp.ne.s32.totalorder %s1563_s24, 1 }
 0x243   : > { %916 = vmatpush.bf16.msra.mxu0 %v1439_v4  ;;  %1448 = vmatpush.bf16.msra.mxu2 %v1439_v4  ;;  %v1436_v30 = vld [vmem:[%s1667_s16 + $0x20] sm:$0xff]  ;;  %v1435_v35 = vld [vmem:[%s1667_s16 + $0x18] sm:$0xff]  ;;  %v1434_v39 = vld [vmem:[%s1667_s16 + $0x10] sm:$0xff] }
 0x244   : > { %v1433_v7 = vld [vmem:[%s1667_s16 + $0x8] sm:$0xff]  ;;  %v1432_v8 = vld [vmem:[%s1667_s16] sm:$0xff]  ;;  %v824_v60 = vld [vmem:[#allocation2 + $0x30] sm:$0xff] }
 0x245   : > { %v825_v16 = vld [vmem:[#allocation2] sm:$0xff]  ;;  %v826_v48 = vld [vmem:[#allocation2 + $0x58] sm:$0xff]  ;;  %v834_v15 = vld [vmem:[#allocation2 + $0x10] sm:$0xff] }
 0x246   : > { %v832_v46 = vld [vmem:[#allocation2 + $0x40] sm:$0xff]  ;;  %v840_v10 = vpack.c.bf16 %v825_v16, %v824_v60  ;;  %v827_v14 = vld [vmem:[#allocation2 + $0x18] sm:$0xff]  ;;  %v1446_v21 = vld [vmem:[%s1676_s22 + $0x30] sm:$0xff] }
 0x247   : > { %917 = vmatpush.bf16.msra.mxu0 %v1438_v5  ;;  %1449 = vmatpush.bf16.msra.mxu2 %v1438_v5  ;;  %v833_v9 = vld [vmem:[#allocation2 + $0x20] sm:$0xff]  ;;  %v835_v17 = vld [vmem:[#allocation2 + $0x38] sm:$0xff]  ;;  %v841_v47 = vpack.c.bf16 %v827_v14, %v826_v48  ;;  %v1445_v23 = vld [vmem:[%s1676_s22 + $0x28] sm:$0xff] }
 0x248   : > { %v844_v13 = vpack.c.bf16 %v833_v9, %v832_v46  ;;  %v845_v18 = vpack.c.bf16 %v835_v17, %v834_v15  ;;  %v1447_v20 = vld [vmem:[%s1676_s22 + $0x38] sm:$0xff]  ;;  %v828_v22 = vld [vmem:[#allocation2 + $0x50] sm:$0xff]  ;;  %v829_v1 = vld [vmem:[#allocation2 + $0x68] sm:$0xff] }
 0x249   : > { %1089 = vmatpush.bf16.msra.mxu1 %v1447_v20  ;;  %1456 = vmatpush.bf16.msra.mxu3 %v1447_v20  ;;  %v836_v52 = vld [vmem:[#allocation2 + $0x60] sm:$0xff]  ;;  %v837_v24 = vld [vmem:[#allocation2 + $0x70] sm:$0xff]  ;;  %v842_v19 = vpack.c.bf16 %v829_v1, %v828_v22  ;;  %v830_v28 = vld [vmem:[#allocation2 + $0x8] sm:$0xff] }
 0x24a   : > { %v1444_v25 = vld [vmem:[%s1676_s22 + $0x20] sm:$0xff]  ;;  %v846_v26 = vpack.c.bf16 %v837_v24, %v836_v52  ;;  %v831_v53 = vld [vmem:[#allocation2 + $0x48] sm:$0xff]  ;;  %v838_v29 = vld [vmem:[#allocation2 + $0x78] sm:$0xff] }
 0x24b   : > { %918 = vmatpush.bf16.msra.mxu0 %v1437_v12  ;;  %1450 = vmatpush.bf16.msra.mxu2 %v1437_v12  ;;  %v839_v31 = vld [vmem:[#allocation2 + $0x28] sm:$0xff]  ;;  %v843_v33 = vpack.c.bf16 %v831_v53, %v830_v28  ;;  %v1443_v34 = vld [vmem:[%s1676_s22 + $0x18] sm:$0xff]  ;;  %v1442_v27 = vld [vmem:[%s1676_s22 + $0x10] sm:$0xff] }
 0x24c   : > { %v847_v37 = vpack.c.bf16 %v839_v31, %v838_v29  ;;  %v1441_v41 = vld [vmem:[%s1676_s22 + $0x8] sm:$0xff]  ;;  %v1440_v6 = vld [vmem:[%s1676_s22] sm:$0xff] }
 0x24d   : > { %1090 = vmatpush.bf16.msra.mxu1 %v1446_v21  ;;  %1457 = vmatpush.bf16.msra.mxu3 %v1446_v21  ;;  %v1539_v45 = vld [vmem:[%s345_s19] ss:$0 sm:$0xff] }
 0x24e   : > { %v1540_v31 = vld [vmem:[%s353_s10] ss:$0 sm:$0xff] }
 0x24f   : > { %919 = vmatpush.bf16.msra.mxu0 %v1436_v30  ;;  %1451 = vmatpush.bf16.msra.mxu2 %v1436_v30 }
 0x251   : > { %1091 = vmatpush.bf16.msra.mxu1 %v1445_v23  ;;  %1458 = vmatpush.bf16.msra.mxu3 %v1445_v23 }
 0x253   : > { %920 = vmatpush.bf16.msra.mxu0 %v1435_v35  ;;  %1452 = vmatpush.bf16.msra.mxu2 %v1435_v35 }
 0x255   : > { %1092 = vmatpush.bf16.msra.mxu1 %v1444_v25  ;;  %1459 = vmatpush.bf16.msra.mxu3 %v1444_v25 }
 0x257   : > { %921 = vmatpush.bf16.msra.mxu0 %v1434_v39  ;;  %1453 = vmatpush.bf16.msra.mxu2 %v1434_v39 }
 0x259   : > { %1093 = vmatpush.bf16.msra.mxu1 %v1443_v34  ;;  %1460 = vmatpush.bf16.msra.mxu3 %v1443_v34 }
 0x25b   : > { %922 = vmatpush.bf16.msra.mxu0 %v1433_v7  ;;  %1454 = vmatpush.bf16.msra.mxu2 %v1433_v7 }
 0x25d   : > { %1094 = vmatpush.bf16.msra.mxu1 %v1442_v27  ;;  %1461 = vmatpush.bf16.msra.mxu3 %v1442_v27 }
 0x25f   : > { %923 = vmatpush.bf16.msra.mxu0 %v1432_v8  ;;  %1455 = vmatpush.bf16.msra.mxu2 %v1432_v8 }
 0x261   : > { %1095 = vmatpush.bf16.msra.mxu1 %v1441_v41  ;;  %1462 = vmatpush.bf16.msra.mxu3 %v1441_v41 }
 0x262   : > { %924 = vmatmul.bf16.vlgmr.msra.gmra.mxu0 %v840_v10  ;;  %944 = vmatmul.bf16.vlgmr.msra.gmra.mxu2 %v844_v13 }
 0x265   : > { %1096 = vmatpush.bf16.msra.mxu1 %v1440_v6  ;;  %1463 = vmatpush.bf16.msra.mxu3 %v1440_v6 }
 0x272   : > { %929 = vmatmul.bf16.gmra.mxu0 %v841_v47  ;;  %949 = vmatmul.bf16.gmra.mxu2 %v845_v18 }
 0x282   : > { %934 = vmatmul.bf16.gmra.mxu0 %v842_v19  ;;  %954 = vmatmul.bf16.gmra.mxu2 %v846_v26 }
 0x292   : > { %939 = vmatmul.bf16.gmra.mxu0 %v843_v33  ;;  %959 = vmatmul.bf16.gmra.mxu2 %v847_v37 }
 0x2df   : > { %v925_v43 = vpop.f32.mrf.mxu0 }
 0x2e0   : > { %v926_v36 = vadd.f32 %v1539_v45, %v925_v43 }
 0x2e2   : > { %v997_v50 = vmax.f32 %v926_v36, 0.0 }
 0x2e5   : > { %v945_v49 = vpop.f32.mrf.mxu2 }
 0x2e6   : > { %v946_v54 = vadd.f32 %v1539_v45, %v945_v49 }
 0x2e7   : > { %v927_v58 = vpop.f32.mrf.mxu0 }
 0x2e8   : > { %v928_v51 = vadd.f32 %v1539_v45, %v927_v58  ;;  %v1005_v40 = vmax.f32 %v946_v54, 0.0 }
 0x2ea   : > { %v998_v38 = vmax.f32 %v928_v51, 0.0 }
 0x2ec   : > { %v1013_v56 = vpack.c.bf16 %v998_v38, %v997_v50 }
 0x2ed   : > { %v947_v57 = vpop.f32.mrf.mxu2 }
 0x2ee   : > { %v948_v32 = vadd.f32 %v1539_v45, %v947_v57  ;;  %1097 = vmatmul.bf16.vlgmr.msra.gmra.mxu1 %v1013_v56 }
 0x2ef   : > { %v930_v55 = vpop.f32.mrf.mxu0 }
 0x2f0   : > { %v1006_v11 = vmax.f32 %v948_v32, 0.0  ;;  %v931_v63 = vadd.f32 %v1539_v45, %v930_v55 }
 0x2f2   : > { %v1017_v59 = vpack.c.bf16 %v1006_v11, %v1005_v40  ;;  %v999_v42 = vmax.f32 %v931_v63, 0.0 }
 0x2f4   : > { %1117 = vmatmul.bf16.vlgmr.msra.gmra.mxu3 %v1017_v59 }
 0x2f5   : > { %v950_v61 = vpop.f32.mrf.mxu2 }
 0x2f6   : > { %v951_v3 = vadd.f32 %v1539_v45, %v950_v61 }
 0x2f7   : > { %v932_v62 = vpop.f32.mrf.mxu0 }
 0x2f8   : > { %v933_v0 = vadd.f32 %v1539_v45, %v932_v62  ;;  %v1007_v30 = vmax.f32 %v951_v3, 0.0 }
 0x2fa   : > { %v1000_v2 = vmax.f32 %v933_v0, 0.0 }
 0x2fc   : > { %v1014_v44 = vpack.c.bf16 %v1000_v2, %v999_v42 }
 0x2fd   : > { %v952_v4 = vpop.f32.mrf.mxu2 }
 0x2fe   : > { %v953_v5 = vadd.f32 %v1539_v45, %v952_v4  ;;  %1102 = vmatmul.bf16.gmra.mxu1 %v1014_v44 }
 0x2ff   : > { %v935_v12 = vpop.f32.mrf.mxu0 }
 0x300   : > { %v1008_v35 = vmax.f32 %v953_v5, 0.0  ;;  %v936_v7 = vadd.f32 %v1539_v45, %v935_v12 }
 0x302   : > { %v1018_v39 = vpack.c.bf16 %v1008_v35, %v1007_v30  ;;  %v1001_v16 = vmax.f32 %v936_v7, 0.0 }
 0x304   : > { %1122 = vmatmul.bf16.gmra.mxu3 %v1018_v39 }
 0x305   : > { %v955_v8 = vpop.f32.mrf.mxu2 }
 0x306   : > { %v956_v10 = vadd.f32 %v1539_v45, %v955_v8 }
 0x307   : > { %v937_v60 = vpop.f32.mrf.mxu0 }
 0x308   : > { %v938_v46 = vadd.f32 %v1539_v45, %v937_v60  ;;  %v1009_v17 = vmax.f32 %v956_v10, 0.0 }
 0x30a   : > { %v1002_v9 = vmax.f32 %v938_v46, 0.0 }
 0x30c   : > { %v1015_v13 = vpack.c.bf16 %v1002_v9, %v1001_v16 }
 0x30d   : > { %v957_v48 = vpop.f32.mrf.mxu2 }
 0x30e   : > { %v958_v14 = vadd.f32 %v1539_v45, %v957_v48  ;;  %1107 = vmatmul.bf16.gmra.mxu1 %v1015_v13 }
 0x30f   : > { %v940_v15 = vpop.f32.mrf.mxu0 }
 0x310   : > { %v1010_v47 = vmax.f32 %v958_v14, 0.0  ;;  %v941_v20 = vadd.f32 %v1539_v45, %v940_v15 }
 0x312   : > { %v1019_v18 = vpack.c.bf16 %v1010_v47, %v1009_v17  ;;  %v1003_v22 = vmax.f32 %v941_v20, 0.0 }
 0x314   : > { %1127 = vmatmul.bf16.gmra.mxu3 %v1019_v18 }
 0x315   : > { %v960_v21 = vpop.f32.mrf.mxu2 }
 0x316   : > { %v961_v24 = vadd.f32 %v1539_v45, %v960_v21 }
 0x317   : > { %v942_v23 = vpop.f32.mrf.mxu0 }
 0x318   : > { %v943_v1 = vadd.f32 %v1539_v45, %v942_v23  ;;  %v1011_v28 = vmax.f32 %v961_v24, 0.0 }
 0x31a   : > { %v1004_v52 = vmax.f32 %v943_v1, 0.0 }
 0x31c   : > { %v1016_v25 = vpack.c.bf16 %v1004_v52, %v1003_v22 }
 0x31d   : > { %v962_v19 = vpop.f32.mrf.mxu2 }
 0x31e   : > { %v963_v26 = vadd.f32 %v1539_v45, %v962_v19  ;;  %1112 = vmatmul.bf16.gmra.mxu1 %v1016_v25 }
 0x320   : > { %v1012_v53 = vmax.f32 %v963_v26, 0.0 }
 0x322   : > { %v1020_v29 = vpack.c.bf16 %v1012_v53, %v1011_v28 }
 0x324   : > { %1132 = vmatmul.bf16.gmra.mxu3 %v1020_v29 }
 0x36b   : > { %v1098_v33 = vpop.f32.mrf.mxu1 }
 0x36c   : > { %v1099_v37 = vadd.f32 %v1540_v31, %v1098_v33 }
 0x36e   : > { %1138 = vst [vmem:[#allocation2 + $0x30] sm:$0xff] %v1099_v37 }
 0x373   : > { %v1100_v34 = vpop.f32.mrf.mxu1 }
 0x374   : > { %v1101_v27 = vadd.f32 %v1540_v31, %v1100_v34 }
 0x376   : > { %1139 = vst [vmem:[#allocation2] sm:$0xff] %v1101_v27 }
 0x377   : > { %v1118_v41 = vpop.f32.mrf.mxu3 }
 0x378   : > { %v1119_v6 = vadd.f32 %v1540_v31, %v1118_v41 }
 0x37a   : > { %1146 = vst [vmem:[#allocation2 + $0x40] sm:$0xff] %v1119_v6 }
 0x37b   : > { %v1103_v43 = vpop.f32.mrf.mxu1 }
 0x37c   : > { %v1104_v45 = vadd.f32 %v1540_v31, %v1103_v43 }
 0x37e   : > { %1140 = vst [vmem:[#allocation2 + $0x58] sm:$0xff] %v1104_v45 }
 0x37f   : > { %v1120_v36 = vpop.f32.mrf.mxu3 }
 0x380   : > { %v1121_v49 = vadd.f32 %v1540_v31, %v1120_v36 }
 0x382   : > { %1147 = vst [vmem:[#allocation2 + $0x20] sm:$0xff] %v1121_v49 }
 0x383   : > { %v1105_v58 = vpop.f32.mrf.mxu1 }
 0x384   : > { %v1106_v50 = vadd.f32 %v1540_v31, %v1105_v58 }
 0x386   : > { %1141 = vst [vmem:[#allocation2 + $0x18] sm:$0xff] %v1106_v50 }
 0x387   : > { %v1123_v51 = vpop.f32.mrf.mxu3 }
 0x388   : > { %v1124_v38 = vadd.f32 %v1540_v31, %v1123_v51 }
 0x38a   : > { %1148 = vst [vmem:[#allocation2 + $0x10] sm:$0xff] %v1124_v38 }
 0x38b   : > { %v1108_v54 = vpop.f32.mrf.mxu1 }
 0x38c   : > { %v1109_v56 = vadd.f32 %v1540_v31, %v1108_v54 }
 0x38e   : > { %1142 = vst [vmem:[#allocation2 + $0x50] sm:$0xff] %v1109_v56 }
 0x38f   : > { %v1125_v57 = vpop.f32.mrf.mxu3 }
 0x390   : > { %v1126_v32 = vadd.f32 %v1540_v31, %v1125_v57 }
 0x392   : > { %1149 = vst [vmem:[#allocation2 + $0x38] sm:$0xff] %v1126_v32 }
 0x393   : > { %v1110_v55 = vpop.f32.mrf.mxu1 }
 0x394   : > { %v1111_v40 = vadd.f32 %v1540_v31, %v1110_v55 }
 0x396   : > { %1143 = vst [vmem:[#allocation2 + $0x68] sm:$0xff] %v1111_v40 }
 0x397   : > { %v1128_v11 = vpop.f32.mrf.mxu3 }
 0x398   : > { %v1129_v59 = vadd.f32 %v1540_v31, %v1128_v11 }
 0x39a   : > { %1150 = vst [vmem:[#allocation2 + $0x60] sm:$0xff] %v1129_v59 }
 0x39b   : > { %v1113_v63 = vpop.f32.mrf.mxu1 }
 0x39c   : > { %v1114_v61 = vadd.f32 %v1540_v31, %v1113_v63 }
 0x39e   : > { %1144 = vst [vmem:[#allocation2 + $0x8] sm:$0xff] %v1114_v61 }
 0x39f   : > { %v1130_v62 = vpop.f32.mrf.mxu3 }
 0x3a0   : > { %v1131_v42 = vadd.f32 %v1540_v31, %v1130_v62 }
 0x3a2   : > { %1151 = vst [vmem:[#allocation2 + $0x70] sm:$0xff] %v1131_v42 }
 0x3a3   : > { %v1115_v0 = vpop.f32.mrf.mxu1 }
 0x3a4   : > { %v1116_v2 = vadd.f32 %v1540_v31, %v1115_v0 }
 0x3a6   : > { %1145 = vst [vmem:[#allocation2 + $0x48] sm:$0xff] %v1116_v2 }
 0x3a7   : > { %v1133_v3 = vpop.f32.mrf.mxu3 }
 0x3a8   : > { %v1134_v44 = vadd.f32 %v1540_v31, %v1133_v3 }
 0x3aa   : > { %1152 = vst [vmem:[#allocation2 + $0x78] sm:$0xff] %v1134_v44 }
 0x3ae   : > { %1157 = sbr.rel (%p1425_p8) target bundleno = 1235 (0x4d3), region = 56 }
 0x3af   : > { %v1135_v4 = vpop.f32.mrf.mxu3 }
 0x3b0   : > { %v1136_v5 = vadd.f32 %v1540_v31, %v1135_v4 }
 0x3b2   : > { %1153 = vst [vmem:[#allocation2 + $0x28] sm:$0xff] %v1136_v5 }
 0x3b3   : > { %1158 = vxpose.xlu0.b32.start [1/16] %v1099_v37, 128  ;;  %v1190_v12 = vld [vmem:[%s1661_s12] sm:$0xff]  ;;  %v1191_v39 = vld [vmem:[%s1661_s12 + $0x8] sm:$0xff]  ;;  %v1192_v60 = vld [vmem:[%s1661_s12 + $0x10] sm:$0xff] }
 0x3b4   : > { %v1193_v9 = vld [vmem:[%s1661_s12 + $0x18] sm:$0xff]  ;;  %v1194_v48 = vld [vmem:[%s1661_s12 + $0x20] sm:$0xff]  ;;  %v1195_v17 = vld [vmem:[%s1661_s12 + $0x28] sm:$0xff] }
 0x3b5   : > { %v1196_v20 = vld [vmem:[%s1661_s12 + $0x30] sm:$0xff]  ;;  %v1197_v22 = vld [vmem:[%s1661_s12 + $0x38] sm:$0xff]  ;;  %v1198_v24 = vld [vmem:[%s1661_s12 + $0x40] sm:$0xff] }
 0x3b6   : > { %v1199_v26 = vld [vmem:[%s1661_s12 + $0x48] sm:$0xff]  ;;  %v1200_v29 = vld [vmem:[%s1661_s12 + $0x50] sm:$0xff]  ;;  %v1201_v37 = vld [vmem:[%s1661_s12 + $0x58] sm:$0xff] }
 0x3b7   : > { %v1202_v41 = vld [vmem:[%s1661_s12 + $0x60] sm:$0xff]  ;;  %v1204_v58 = vld [vmem:[%s1661_s12 + $0x70] sm:$0xff] }
 0x3bb   : > { %1159 = vxpose.xlu0.b32.cont [2/16] %v1101_v27, 128 }
 0x3c3   : > { %1160 = vxpose.xlu0.b32.cont [3/16] %v1104_v45, 128  ;;  %v1203_v45 = vld [vmem:[%s1661_s12 + $0x68] sm:$0xff] }
 0x3cb   : > { %1161 = vxpose.xlu0.b32.cont [4/16] %v1106_v50, 128 }
 0x3d3   : > { %1162 = vxpose.xlu0.b32.cont [5/16] %v1109_v56, 128 }
 0x3db   : > { %1163 = vxpose.xlu0.b32.cont [6/16] %v1111_v40, 128 }
 0x3e3   : > { %1164 = vxpose.xlu0.b32.cont [7/16] %v1114_v61, 128 }
 0x3eb   : > { %1165 = vxpose.xlu0.b32.cont [8/16] %v1116_v2, 128 }
 0x3f3   : > { %1166 = vxpose.xlu0.b32.cont [9/16] %v1119_v6, 128 }
 0x3fb   : > { %1167 = vxpose.xlu0.b32.cont [10/16] %v1121_v49, 128 }
 0x403   : > { %1168 = vxpose.xlu0.b32.cont [11/16] %v1124_v38, 128  ;;  %v1205_v38 = vld [vmem:[%s1661_s12 + $0x78] sm:$0xff] }
 0x40b   : > { %1169 = vxpose.xlu0.b32.cont [12/16] %v1126_v32, 128 }
 0x413   : > { %1170 = vxpose.xlu0.b32.cont [13/16] %v1129_v59, 128 }
 0x41b   : > { %1171 = vxpose.xlu0.b32.cont [14/16] %v1131_v42, 128 }
 0x423   : > { %1172 = vxpose.xlu0.b32.cont [15/16] %v1134_v44, 128 }
 0x42b   : > { %1173 = vxpose.xlu0.b32.end [16/16] %v1136_v5, 128 }
 0x457   : > { %v1174_v30 = vpop.trf.xlu0 }
 0x458   : > { %v1206_v35 = vadd.f32 %v1190_v12, %v1174_v30 }
 0x45a   : > { %1222 = vst [vmem:[%s1685_s30] sm:$0xff] %v1206_v35 }
 0x45f   : > { %v1175_v7 = vpop.trf.xlu0 }
 0x460   : > { %v1207_v8 = vadd.f32 %v1191_v39, %v1175_v7 }
 0x462   : > { %1223 = vst [vmem:[%s1685_s30 + $0x8] sm:$0xff] %v1207_v8 }
 0x467   : > { %v1176_v16 = vpop.trf.xlu0 }
 0x468   : > { %v1208_v46 = vadd.f32 %v1192_v60, %v1176_v16 }
 0x46a   : > { %1224 = vst [vmem:[%s1685_s30 + $0x10] sm:$0xff] %v1208_v46 }
 0x46f   : > { %v1177_v10 = vpop.trf.xlu0 }
 0x470   : > { %v1209_v13 = vadd.f32 %v1193_v9, %v1177_v10 }
 0x472   : > { %1225 = vst [vmem:[%s1685_s30 + $0x18] sm:$0xff] %v1209_v13 }
 0x477   : > { %v1178_v14 = vpop.trf.xlu0 }
 0x478   : > { %v1210_v15 = vadd.f32 %v1194_v48, %v1178_v14 }
 0x47a   : > { %1226 = vst [vmem:[%s1685_s30 + $0x20] sm:$0xff] %v1210_v15 }
 0x47f   : > { %v1179_v47 = vpop.trf.xlu0 }
 0x480   : > { %v1211_v18 = vadd.f32 %v1195_v17, %v1179_v47 }
 0x482   : > { %1227 = vst [vmem:[%s1685_s30 + $0x28] sm:$0xff] %v1211_v18 }
 0x487   : > { %v1180_v21 = vpop.trf.xlu0 }
 0x488   : > { %v1212_v23 = vadd.f32 %v1196_v20, %v1180_v21 }
 0x48a   : > { %1228 = vst [vmem:[%s1685_s30 + $0x30] sm:$0xff] %v1212_v23 }
 0x48f   : > { %v1181_v1 = vpop.trf.xlu0 }
 0x490   : > { %v1213_v52 = vadd.f32 %v1197_v22, %v1181_v1 }
 0x492   : > { %1229 = vst [vmem:[%s1685_s30 + $0x38] sm:$0xff] %v1213_v52 }
 0x497   : > { %v1182_v25 = vpop.trf.xlu0 }
 0x498   : > { %v1214_v19 = vadd.f32 %v1198_v24, %v1182_v25 }
 0x49a   : > { %1230 = vst [vmem:[%s1685_s30 + $0x40] sm:$0xff] %v1214_v19 }
 0x49f   : > { %v1183_v28 = vpop.trf.xlu0 }
 0x4a0   : > { %v1215_v53 = vadd.f32 %v1199_v26, %v1183_v28 }
 0x4a2   : > { %1231 = vst [vmem:[%s1685_s30 + $0x48] sm:$0xff] %v1215_v53 }
 0x4a7   : > { %v1184_v31 = vpop.trf.xlu0 }
 0x4a8   : > { %v1216_v33 = vadd.f32 %v1200_v29, %v1184_v31 }
 0x4aa   : > { %1232 = vst [vmem:[%s1685_s30 + $0x50] sm:$0xff] %v1216_v33 }
 0x4af   : > { %v1185_v34 = vpop.trf.xlu0 }
 0x4b0   : > { %v1217_v27 = vadd.f32 %v1201_v37, %v1185_v34 }
 0x4b2   : > { %1233 = vst [vmem:[%s1685_s30 + $0x58] sm:$0xff] %v1217_v27 }
 0x4b7   : > { %v1186_v6 = vpop.trf.xlu0 }
 0x4b8   : > { %v1218_v43 = vadd.f32 %v1202_v41, %v1186_v6 }
 0x4ba   : > { %1234 = vst [vmem:[%s1685_s30 + $0x60] sm:$0xff] %v1218_v43 }
 0x4bf   : > { %v1187_v36 = vpop.trf.xlu0 }
 0x4c0   : > { %v1219_v49 = vadd.f32 %v1203_v45, %v1187_v36 }
 0x4c2   : > { %1235 = vst [vmem:[%s1685_s30 + $0x68] sm:$0xff] %v1219_v49 }
 0x4c7   : > { %v1188_v50 = vpop.trf.xlu0 }
 0x4c8   : > { %v1220_v51 = vadd.f32 %v1204_v58, %v1188_v50 }
 0x4ca   : > { %1236 = vst [vmem:[%s1685_s30 + $0x70] sm:$0xff] %v1220_v51 }
 0x4cf   : > { %v1189_v54 = vpop.trf.xlu0 }
 0x4d0   : > { %v1221_v56 = vadd.f32 %v1205_v38, %v1189_v54 }
 0x4d2   : > { %1237 = vst [vmem:[%s1685_s30 + $0x78] sm:$0xff] %v1221_v56 }
 0x4d3 PF: > { %s17_s28 = sadd.s32 1, %s1579_s28   ;;  %s1993_s8 = sld [smem:[#allocation3_spill]] }
 0x4d4   : > { %p14_p9 = scmp.ge.s32.totalorder %s17_s28, 6   ;;  %s1994_s24 = smov %s1571_s26 }
 0x4d5   : > { %s1995_s25 = smov %s1575_s27  ;;  %s1996_s26 = smov %s1999_s29 }
 0x4d6   :  { %16 = sbr.rel (!%p14_p9) target bundleno = 3 (0x3), region = 98 }
 0x4d9   : > { %s1997_s27 = smov %s1993_s8 }

// kernel: mlp_mixer_pallas.3
= control target key start
LH: loop header
LB: loop body
LE: loop exit
PB: predicated region body
PF: predicated region fallthrough
CT: control target
= control target key end

     0   :  { %s1558_s24 = smov 0   ;;  %s1560_s25 = smov 0   ;;  %s2074_s0 = inlined_call_operand.vmem [shape: f32[2,128,128], index: 0, kind: input, shape index: {}]   ;;  %s2075_s1 = inlined_call_operand.vmem [shape: f32[1,128], index: 1, kind: input, shape index: {}]   ;;  %s2076_s2 = inlined_call_operand.vmem [shape: f32[1,128], index: 2, kind: input, shape index: {}]   ;;  %s2077_s3 = inlined_call_operand.vmem [shape: bf16[2,128,128], index: 3, kind: input, shape index: {}]   ;;  %s2078_s4 = inlined_call_operand.vmem [shape: f32[2,1,128], index: 4, kind: input, shape index: {}]   ;;  %s2079_s5 = inlined_call_operand.vmem [shape: bf16[2,128,128], index: 5, kind: input, shape index: {}]   ;;  %s2080_s6 = inlined_call_operand.vmem [shape: f32[2,1,128], index: 6, kind: input, shape index: {}]   ;;  %s2081_s7 = inlined_call_operand.vmem [shape: f32[2,128,128], index: 7, kind: output, shape index: {}]  }
   0x1   :  { %2082 = sst [smem:[#allocation4_spill]] %s2074_s0  ;;  %s1562_s26 = smov 0  }
   0x2   :  { %s1564_s27 = smov 0   ;;  %s1566_s28 = smov 0  }
   0x3 LB: > { %s26_s29 = sadd.s32 1, %s1507_s26  ;;  %s29_s30 = sadd.s32 1, %s1511_s27  ;;  %s1515_s28 = sphi %s1566_s28, %s17_s28   ;;  %s1511_s27 = sphi %s1564_s27, %s2089_s27   ;;  %s1507_s26 = sphi %s1562_s26, %s2088_s26   ;;  %s1503_s25 = sphi %s1560_s25, %s2087_s25   ;;  %s1499_s24 = sphi %s1558_s24, %s2086_s24  }
   0x4   : > { %p27_p0 = scmp.ge.s32.totalorder %s26_s29, 2  ;;  %p1286_p1 = scmp.ge.s32.totalorder %s1515_s28, 1 }
   0x5   : > { %p285_p2 = scmp.lt.s32.totalorder %s1515_s28, 5 }
   0x6   : > { %s2091_s29 = smov (%p27_p0, %s26_s29), 0  ;;  %s2093_s30 = smov (!%p27_p0, %s29_s30), %s1511_s27 }
   0x7   : > { %p286_p3 = pnand %p1286_p1, %p285_p2  ;;  %p31_p4 = scmp.ge.s32.totalorder %s2093_s30, 2 }
   0x8   : > { %p333_p5 = scmp.lt.s32.totalorder (!%p286_p3), %s1503_s25, 1  ;;  %p338_p6 = scmp.lt.s32.totalorder (!%p286_p3), %s1499_s24, 1 }
   0x9   : > { %s2095_s30 = smov (%p31_p4, %s2093_s30), 0  ;;  %289 = sbr.rel (%p286_p3) target bundleno = 735 (0x2df), region = 48 }
   0xa   : > { %2083 = sst [smem:[#allocation3_spill]] %s2095_s30  ;;  %p1295_p7 = scmp.ne.s32.totalorder (!%p286_p3), %s1499_s24, 0 }
   0xb   : > { %s2084_s0 = sld [smem:[#allocation4_spill]] (!%p286_p3) }
   0xe   : > { %s2097_s25 = smov (!%p333_p5, %s1503_s25), 1 }
   0xf   : > { %s1592_s8 = scalar_select %p338_p6, %s1499_s24, 1 }
  0x10   : > { %s1364_s9 = sshll.u32 %s2097_s25, 7  ;;  %362 = sbr.rel (%p1295_p7) target bundleno = 347 (0x15b), region = 52 }
  0x11   : > { %s1597_s12 = scalar_lea.vmem %s2084_s0, %s1364_s9  ;;  %s1365_s13 = sshll.u32 %s1592_s8, 6 }
  0x12   : > { %s1603_s16 = scalar_lea.vmem %s2077_s3, %s1365_s13  ;;  %s345_s19 = scalar_lea.vmem %s2078_s4, %s1592_s8 }
  0x13   : > { %s1612_s22 = scalar_lea.vmem %s2079_s5, %s1365_s13  ;;  %s353_s10 = scalar_lea.vmem %s2080_s6, %s1592_s8 }
  0x14   : > { %s1621_s30 = scalar_lea.vmem %s2081_s7, %s1364_s9 }
  0x15   : > { %v381_v0 = vlaneseq  ;;  %v1625_v2 = vld [vmem:[%s1597_s12 + $0x20] sm:$0xff]  ;;  %v365_v3 = vld [vmem:[%s1597_s12 + $0x10] sm:$0xff]  ;;  %v1517_v5 = vmov 0.0   ;;  %v1636_v10 = vld [vmem:[%s1597_s12 + $0x28] sm:$0xff] }
  0x16   : > { %v363_v4 = vld [vmem:[%s1597_s12] sm:$0xff]  ;;  %v1639_v11 = vld [vmem:[%s1597_s12 + $0x18] sm:$0xff]  ;;  %v1642_v12 = vld [vmem:[%s1597_s12 + $0x8] sm:$0xff] }
  0x17   : > { %v382_v1 = vand.u32 127, %v381_v0  ;;  %v1651_v16 = vld [vmem:[%s1597_s12 + $0x40] sm:$0xff]  ;;  %v1654_v17 = vld [vmem:[%s1597_s12 + $0x38] sm:$0xff]  ;;  %v1657_v18 = vld [vmem:[%s1597_s12 + $0x30] sm:$0xff] }
  0x18   : > { %v1666_v22 = vld [vmem:[%s1597_s12 + $0x58] sm:$0xff]  ;;  %v1669_v23 = vld [vmem:[%s1597_s12 + $0x50] sm:$0xff]  ;;  %v1672_v24 = vld [vmem:[%s1597_s12 + $0x48] sm:$0xff] }
  0x19   : > { %vm383_vm0 = vcmp.lt.s32.totalorder %v382_v1, 8  ;;  %v1681_v28 = vld [vmem:[%s1597_s12 + $0x70] sm:$0xff]  ;;  %v1684_v29 = vld [vmem:[%s1597_s12 + $0x68] sm:$0xff]  ;;  %v1687_v30 = vld [vmem:[%s1597_s12 + $0x60] sm:$0xff] }
  0x1a   : > { %v1629_v6 = vsel %vm383_vm0, 1.0, %v1517_v5  ;;  %v1696_v34 = vld [vmem:[%s1597_s12 + $0x78] sm:$0xff] }
  0x1b   : > { %v390_v7 = vmul.f32 %v1629_v6, %v1625_v2  ;;  %v388_v8 = vmul.f32 %v1629_v6, %v365_v3  ;;  %v386_v9 = vmul.f32 %v1629_v6, %v363_v4  ;;  %v391_v13 = vmul.f32 %v1629_v6, %v1636_v10 }
  0x1c   : > { %v389_v14 = vmul.f32 %v1629_v6, %v1639_v11  ;;  %v387_v15 = vmul.f32 %v1629_v6, %v1642_v12  ;;  %v394_v19 = vmul.f32 %v1629_v6, %v1651_v16  ;;  %v393_v20 = vmul.f32 %v1629_v6, %v1654_v17 }
  0x1d   : > { %410 = vadd.xlane.f32.xlu2 %v390_v7  ;;  %406 = vadd.xlane.f32.xlu1 %v388_v8  ;;  %v392_v21 = vmul.f32 %v1629_v6, %v1657_v18  ;;  %v397_v25 = vmul.f32 %v1629_v6, %v1666_v22  ;;  %v396_v26 = vmul.f32 %v1629_v6, %v1669_v23 }
  0x1e   : > { %402 = vadd.xlane.f32.xlu0 %v386_v9  ;;  %v395_v27 = vmul.f32 %v1629_v6, %v1672_v24  ;;  %v400_v31 = vmul.f32 %v1629_v6, %v1681_v28  ;;  %v399_v32 = vmul.f32 %v1629_v6, %v1684_v29  ;;  %v398_v33 = vmul.f32 %v1629_v6, %v1687_v30 }
  0x1f   : > { %v401_v35 = vmul.f32 %v1629_v6, %v1696_v34 }
  0x25   : > { %412 = vadd.xlane.f32.xlu2 %v391_v13  ;;  %408 = vadd.xlane.f32.xlu1 %v389_v14 }
  0x26   : > { %404 = vadd.xlane.f32.xlu0 %v387_v15 }
  0x2d   : > { %418 = vadd.xlane.f32.xlu2 %v394_v19  ;;  %416 = vadd.xlane.f32.xlu1 %v393_v20 }
  0x2e   : > { %414 = vadd.xlane.f32.xlu0 %v392_v21 }
  0x35   : > { %424 = vadd.xlane.f32.xlu2 %v397_v25  ;;  %422 = vadd.xlane.f32.xlu1 %v396_v26 }
  0x36   : > { %420 = vadd.xlane.f32.xlu0 %v395_v27 }
  0x3d   : > { %430 = vadd.xlane.f32.xlu2 %v400_v31  ;;  %428 = vadd.xlane.f32.xlu1 %v399_v32 }
  0x3e   : > { %426 = vadd.xlane.f32.xlu0 %v398_v33 }
  0x46   : > { %432 = vadd.xlane.f32.xlu0 %v401_v35 }
  0x90   : > { %v411_v36 = vpop.xlane.xlu2 %410  ;;  %v407_v37 = vpop.xlane.xlu1 %406 }
  0x91   : > { %v436_v38 = vmul.f32 0.125, %v407_v37  ;;  %v403_v39 = vpop.xlane.xlu0 %402  ;;  %v438_v55 = vmul.f32 0.125, %v411_v36 }
  0x92   : > { %v434_v40 = vmul.f32 0.125, %v403_v39 }
  0x93   : > { %v452_v41 = vsub.f32 %v365_v3, %v436_v38  ;;  %v454_v62 = vsub.f32 %v1625_v2, %v438_v55 }
  0x94   : > { %v450_v42 = vsub.f32 %v363_v4, %v434_v40 }
  0x95   : > { %v1701_v43 = vmul.f32 %v1629_v6, %v452_v41 }
  0x96   : > { %v1704_v44 = vmul.f32 %v1629_v6, %v450_v42 }
  0x97   : > { %v484_v45 = vmul.f32 %v1701_v43, %v1701_v43 }
  0x98   : > { %v413_v46 = vpop.xlane.xlu2 %412  ;;  %v409_v47 = vpop.xlane.xlu1 %408  ;;  %v482_v48 = vmul.f32 %v1704_v44, %v1704_v44 }
  0x99   : > { %v439_v49 = vmul.f32 0.125, %v413_v46  ;;  %v437_v50 = vmul.f32 0.125, %v409_v47  ;;  %v405_v51 = vpop.xlane.xlu0 %404  ;;  %502 = vadd.xlane.f32.xlu0 %v484_v45 }
  0x9a   : > { %v435_v52 = vmul.f32 0.125, %v405_v51  ;;  %498 = vadd.xlane.f32.xlu1 %v482_v48 }
  0x9b   : > { %v455_v53 = vsub.f32 %v1636_v10, %v439_v49  ;;  %v453_v54 = vsub.f32 %v1639_v11, %v437_v50  ;;  %v1732_v10 = vmul.f32 %v1629_v6, %v454_v62 }
  0x9c   : > { %v451_v56 = vsub.f32 %v1642_v12, %v435_v52 }
  0x9d   : > { %v1714_v57 = vmul.f32 %v1629_v6, %v455_v53  ;;  %v1717_v58 = vmul.f32 %v1629_v6, %v453_v54  ;;  %v486_v15 = vmul.f32 %v1732_v10, %v1732_v10 }
  0x9e   : > { %v1720_v59 = vmul.f32 %v1629_v6, %v451_v56 }
  0x9f   : > { %v487_v60 = vmul.f32 %v1714_v57, %v1714_v57  ;;  %v485_v61 = vmul.f32 %v1717_v58, %v1717_v58 }
  0xa0   : > { %v419_v63 = vpop.xlane.xlu2 %418  ;;  %v483_v0 = vmul.f32 %v1720_v59, %v1720_v59  ;;  %v417_v1 = vpop.xlane.xlu1 %416 }
  0xa1   : > { %v442_v3 = vmul.f32 0.125, %v419_v63  ;;  %v415_v4 = vpop.xlane.xlu0 %414  ;;  %508 = vadd.xlane.f32.xlu0 %v487_v60  ;;  %v441_v7 = vmul.f32 0.125, %v417_v1 }
  0xa2   : > { %v440_v5 = vmul.f32 0.125, %v415_v4  ;;  %504 = vadd.xlane.f32.xlu1 %v485_v61  ;;  %500 = vadd.xlane.f32.xlu2 %v483_v0 }
  0xa3   : > { %v458_v8 = vsub.f32 %v1651_v16, %v442_v3  ;;  %v457_v11 = vsub.f32 %v1654_v17, %v441_v7 }
  0xa4   : > { %v456_v9 = vsub.f32 %v1657_v18, %v440_v5 }
  0xa5   : > { %v1735_v2 = vmul.f32 %v1629_v6, %v458_v8  ;;  %v1748_v25 = vmul.f32 %v1629_v6, %v457_v11 }
  0xa6   : > { %v1739_v12 = vmul.f32 %v1629_v6, %v456_v9 }
  0xa7   : > { %v490_v13 = vmul.f32 %v1735_v2, %v1735_v2  ;;  %v489_v33 = vmul.f32 %v1748_v25, %v1748_v25 }
  0xa8   : > { %v425_v14 = vpop.xlane.xlu2 %424  ;;  %v488_v16 = vmul.f32 %v1739_v12, %v1739_v12  ;;  %v423_v18 = vpop.xlane.xlu1 %422 }
  0xa9   : > { %v445_v19 = vmul.f32 0.125, %v425_v14  ;;  %v421_v20 = vpop.xlane.xlu0 %420  ;;  %514 = vadd.xlane.f32.xlu0 %v490_v13  ;;  %v444_v17 = vmul.f32 0.125, %v423_v18 }
  0xaa   : > { %v443_v21 = vmul.f32 0.125, %v421_v20  ;;  %506 = vadd.xlane.f32.xlu2 %v486_v15  ;;  %510 = vadd.xlane.f32.xlu1 %v488_v16 }
  0xab   : > { %v461_v26 = vsub.f32 %v1666_v22, %v445_v19  ;;  %v460_v32 = vsub.f32 %v1669_v23, %v444_v17 }
  0xac   : > { %v459_v27 = vsub.f32 %v1672_v24, %v443_v21 }
  0xad   : > { %v1753_v31 = vmul.f32 %v1629_v6, %v461_v26  ;;  %v1766_v41 = vmul.f32 %v1629_v6, %v460_v32 }
  0xae   : > { %v1759_v35 = vmul.f32 %v1629_v6, %v459_v27 }
  0xaf   : > { %v493_v36 = vmul.f32 %v1753_v31, %v1753_v31  ;;  %v492_v48 = vmul.f32 %v1766_v41, %v1766_v41 }
  0xb0   : > { %v431_v37 = vpop.xlane.xlu2 %430  ;;  %v491_v22 = vmul.f32 %v1759_v35, %v1759_v35  ;;  %v429_v38 = vpop.xlane.xlu1 %428 }
  0xb1   : > { %v448_v24 = vmul.f32 0.125, %v431_v37  ;;  %v427_v39 = vpop.xlane.xlu0 %426  ;;  %520 = vadd.xlane.f32.xlu0 %v493_v36  ;;  %v447_v23 = vmul.f32 0.125, %v429_v38 }
  0xb2   : > { %v446_v40 = vmul.f32 0.125, %v427_v39  ;;  %512 = vadd.xlane.f32.xlu2 %v489_v33  ;;  %516 = vadd.xlane.f32.xlu1 %v491_v22 }
  0xb3   : > { %v464_v42 = vsub.f32 %v1681_v28, %v448_v24  ;;  %v463_v47 = vsub.f32 %v1684_v29, %v447_v23 }
  0xb4   : > { %v462_v45 = vsub.f32 %v1687_v30, %v446_v40 }
  0xb5   : > { %v1771_v46 = vmul.f32 %v1629_v6, %v464_v42  ;;  %v1784_v52 = vmul.f32 %v1629_v6, %v463_v47  ;;  %v1816_v42 = vld [vmem:[%s2075_s1] ss:$0 sm:$0xff] }
  0xb6   : > { %v1777_v49 = vmul.f32 %v1629_v6, %v462_v45 }
  0xb7   : > { %v496_v50 = vmul.f32 %v1771_v46, %v1771_v46  ;;  %v495_v53 = vmul.f32 %v1784_v52, %v1784_v52 }
  0xb8   : > { %v494_v51 = vmul.f32 %v1777_v49, %v1777_v49 }
  0xb9   : > { %v433_v28 = vpop.xlane.xlu0 %432  ;;  %526 = vadd.xlane.f32.xlu0 %v496_v50 }
  0xba   : > { %v449_v30 = vmul.f32 0.125, %v433_v28  ;;  %518 = vadd.xlane.f32.xlu2 %v492_v48  ;;  %522 = vadd.xlane.f32.xlu1 %v494_v51 }
  0xbc   : > { %v465_v29 = vsub.f32 %v1696_v34, %v449_v30 }
  0xbe   : > { %v1790_v54 = vmul.f32 %v1629_v6, %v465_v29  ;;  %v1831_v29 = vld [vmem:[%s2076_s2] ss:$0 sm:$0xff] }
  0xc0   : > { %v497_v55 = vmul.f32 %v1790_v54, %v1790_v54 }
  0xc2   : > { %524 = vadd.xlane.f32.xlu2 %v495_v53  ;;  %528 = vadd.xlane.f32.xlu1 %v497_v55 }
 0x10c   : > { %v503_v56 = vpop.xlane.xlu0 %502 }
 0x10d   : > { %v499_v60 = vpop.xlane.xlu1 %498  ;;  %v532_v61 = vmul.f32 0.125, %v503_v56 }
 0x10e   : > { %v530_v62 = vmul.f32 0.125, %v499_v60 }
 0x10f   : > { %v548_v63 = vadd.f32 1e-05, %v532_v61 }
 0x110   : > { %v546_v0 = vadd.f32 1e-05, %v530_v62 }
 0x111   : > { %1443 = vrsqrt.f32 %v548_v63  ;;  %vm588_vm3 = vweird.f32 %v548_v63 }
 0x112   : > { %1445 = vrsqrt.f32 %v546_v0  ;;  %vm568_vm4 = vweird.f32 %v546_v0 }
 0x114   : > { %v509_v34 = vpop.xlane.xlu0 %508 }
 0x115   : > { %v505_v1 = vpop.xlane.xlu1 %504  ;;  %v501_v3 = vpop.xlane.xlu2 %500  ;;  %v535_v4 = vmul.f32 0.125, %v509_v34 }
 0x116   : > { %v533_v5 = vmul.f32 0.125, %v505_v1  ;;  %v531_v6 = vmul.f32 0.125, %v501_v3 }
 0x117   : > { %v1444_v7 = vpop.eup %1443  ;;  %v1794_v8 = vadd.f32 1e-05, %v535_v4 }
 0x118   : > { %v1446_v9 = vpop.eup %1445  ;;  %v583_v11 = vmul.f32 %v1444_v7, %v548_v63  ;;  %v1796_v13 = vadd.f32 1e-05, %v533_v5  ;;  %v1798_v14 = vadd.f32 1e-05, %v531_v6  ;;  %vm589_vm1 = vweird.f32 %v1444_v7 }
 0x119   : > { %v563_v15 = vmul.f32 %v1446_v9, %v546_v0  ;;  %1447 = vrsqrt.f32 %v1794_v8  ;;  %vm569_vm2 = vweird.f32 %v1446_v9  ;;  %vm590_vm5 = vmor %vm588_vm3, %vm589_vm1  ;;  %vm618_vm7 = vweird.f32 %v1794_v8 }
 0x11a   : > { %v584_v16 = vmul.f32 %v1444_v7, %v583_v11  ;;  %1449 = vrsqrt.f32 %v1796_v13  ;;  %vm570_vm6 = vmor %vm568_vm4, %vm569_vm2  ;;  %vm598_vm11 = vweird.f32 %v1796_v13  ;;  %vm578_vm12 = vweird.f32 %v1798_v14 }
 0x11b   : > { %v564_v18 = vmul.f32 %v1446_v9, %v563_v15  ;;  %1451 = vrsqrt.f32 %v1798_v14 }
 0x11c   : > { %v585_v19 = vmul.f32 0.5, %v584_v16  ;;  %v515_v20 = vpop.xlane.xlu0 %514 }
 0x11d   : > { %v565_v21 = vmul.f32 0.5, %v564_v18  ;;  %v507_v17 = vpop.xlane.xlu2 %506  ;;  %v511_v26 = vpop.xlane.xlu1 %510  ;;  %v538_v36 = vmul.f32 0.125, %v515_v20 }
 0x11e   : > { %v586_v27 = vsub.f32 1.5, %v585_v19  ;;  %v534_v32 = vmul.f32 0.125, %v507_v17  ;;  %v536_v33 = vmul.f32 0.125, %v511_v26 }
 0x11f   : > { %v1803_v37 = vpop.eup %1447  ;;  %v566_v22 = vsub.f32 1.5, %v565_v21  ;;  %v1826_v30 = vadd.f32 1e-05, %v538_v36 }
 0x120   : > { %v1805_v38 = vpop.eup %1449  ;;  %v587_v24 = vmul.f32 %v1444_v7, %v586_v27  ;;  %v613_v39 = vmul.f32 %v1803_v37, %v1794_v8  ;;  %v1809_v40 = vadd.f32 1e-05, %v534_v32  ;;  %v1821_v48 = vadd.f32 1e-05, %v536_v33 }
 0x121   : > { %v1811_v23 = vpop.eup %1451  ;;  %v567_v45 = vmul.f32 %v1446_v9, %v566_v22  ;;  %v593_v47 = vmul.f32 %v1805_v38, %v1796_v13  ;;  %vm619_vm8 = vweird.f32 %v1803_v37  ;;  %vm599_vm9 = vweird.f32 %v1805_v38 }
 0x122   : > { %v591_v50 = vsel %vm590_vm5, %v1444_v7, %v587_v24  ;;  %v573_v51 = vmul.f32 %v1811_v23, %v1798_v14  ;;  %v614_v28 = vmul.f32 %v1803_v37, %v613_v39  ;;  %1453 = vrsqrt.f32 %v1809_v40  ;;  %vm620_vm13 = vmor %vm618_vm7, %vm619_vm8 }
 0x123   : > { %v571_v53 = vsel %vm570_vm6, %v1446_v9, %v567_v45  ;;  %v724_v55 = vmul.f32 %v591_v50, %v1701_v43  ;;  %v594_v56 = vmul.f32 %v1805_v38, %v593_v47  ;;  %1455 = vrsqrt.f32 %v1821_v48  ;;  %vm600_vm14 = vmor %vm598_vm11, %vm599_vm9 }
 0x124   : > { %v722_v60 = vmul.f32 %v571_v53, %v1704_v44  ;;  %v574_v61 = vmul.f32 %v1811_v23, %v573_v51  ;;  %v615_v62 = vmul.f32 0.5, %v614_v28  ;;  %1457 = vrsqrt.f32 %v1826_v30  ;;  %v521_v15 = vpop.xlane.xlu0 %520 }
 0x125   : > { %v743_v63 = vmul.f32 %v1816_v42, %v724_v55  ;;  %v595_v0 = vmul.f32 0.5, %v594_v56  ;;  %v513_v34 = vpop.xlane.xlu2 %512  ;;  %v517_v6 = vpop.xlane.xlu1 %516  ;;  %vm579_vm10 = vweird.f32 %v1811_v23  ;;  %vm608_vm15 = vweird.f32 %v1809_v40 }
 0x126   : > { %v741_v43 = vmul.f32 %v1816_v42, %v722_v60  ;;  %v575_v1 = vmul.f32 0.5, %v574_v61  ;;  %v616_v3 = vsub.f32 1.5, %v615_v62  ;;  %v537_v5 = vmul.f32 0.125, %v513_v34  ;;  %vm580_vm0 = vmor %vm578_vm12, %vm579_vm10 }
 0x127   : > { %v762_v44 = vadd.f32 %v1831_v29, %v743_v63  ;;  %v596_v4 = vsub.f32 1.5, %v595_v0  ;;  %v539_v14 = vmul.f32 0.125, %v517_v6  ;;  %v541_v27 = vmul.f32 0.125, %v521_v15 }
 0x128   : > { %v760_v7 = vadd.f32 %v1831_v29, %v741_v43  ;;  %v576_v9 = vsub.f32 1.5, %v575_v1  ;;  %v617_v11 = vmul.f32 %v1803_v37, %v616_v3  ;;  %v1849_v16 = vpop.eup %1453  ;;  %v1858_v19 = vadd.f32 1e-05, %v537_v5 }
 0x129   : > { %778 = vst [vmem:[#allocation2 + $0x58] sm:$0xff] %v762_v44  ;;  %v597_v18 = vmul.f32 %v1805_v38, %v596_v4  ;;  %v603_v13 = vmul.f32 %v1849_v16, %v1809_v40  ;;  %v1867_v17 = vpop.eup %1455  ;;  %vm628_vm1 = vweird.f32 %v1821_v48  ;;  %vm609_vm2 = vweird.f32 %v1849_v16 }
 0x12a   : > { %776 = vst [vmem:[#allocation2 + $0x30] sm:$0xff] %v760_v7  ;;  %v577_v20 = vmul.f32 %v1811_v23, %v576_v9  ;;  %v621_v21 = vsel %vm620_vm13, %v1803_v37, %v617_v11  ;;  %1459 = vrsqrt.f32 %v1858_v19  ;;  %v1458_v32 = vpop.eup %1457  ;;  %v623_v22 = vmul.f32 %v1867_v17, %v1821_v48  ;;  %vm610_vm5 = vmor %vm608_vm15, %vm609_vm2 }
 0x12b   : > { %v601_v8 = vsel %vm600_vm14, %v1805_v38, %v597_v18  ;;  %v727_v26 = vmul.f32 %v621_v21, %v1714_v57  ;;  %v604_v37 = vmul.f32 %v1849_v16, %v603_v13  ;;  %v643_v57 = vmul.f32 %v1458_v32, %v1826_v30 }
 0x12c   : > { %v725_v33 = vmul.f32 %v601_v8, %v1717_v58  ;;  %v581_v36 = vsel %vm580_vm0, %v1811_v23, %v577_v20  ;;  %v624_v58 = vmul.f32 %v1867_v17, %v623_v22  ;;  %v1891_v56 = vadd.f32 1e-05, %v541_v27  ;;  %v527_v44 = vpop.xlane.xlu0 %526 }
 0x12d   : > { %v723_v38 = vmul.f32 %v581_v36, %v1720_v59  ;;  %v746_v24 = vmul.f32 %v1816_v42, %v727_v26  ;;  %v519_v39 = vpop.xlane.xlu2 %518  ;;  %v605_v47 = vmul.f32 0.5, %v604_v37  ;;  %v644_v51 = vmul.f32 %v1458_v32, %v643_v57  ;;  %v523_v63 = vpop.xlane.xlu1 %522 }
 0x12e   : > { %v744_v45 = vmul.f32 %v1816_v42, %v725_v33  ;;  %v1888_v59 = vadd.f32 1e-05, %v539_v14  ;;  %v625_v55 = vmul.f32 0.5, %v624_v58  ;;  %vm648_vm3 = vweird.f32 %v1826_v30 }
 0x12f   : > { %v742_v23 = vmul.f32 %v1816_v42, %v723_v38  ;;  %v765_v50 = vadd.f32 %v1831_v29, %v746_v24  ;;  %v606_v53 = vsub.f32 1.5, %v605_v47  ;;  %v645_v62 = vmul.f32 0.5, %v644_v51 }
 0x130   : > { %v763_v28 = vadd.f32 %v1831_v29, %v744_v45  ;;  %v1893_v60 = vpop.eup %1459  ;;  %1461 = vrsqrt.f32 %v1888_v59  ;;  %v626_v34 = vsub.f32 1.5, %v625_v55  ;;  %vm629_vm4 = vweird.f32 %v1867_v17 }
 0x131   : > { %v761_v61 = vadd.f32 %v1831_v29, %v742_v23  ;;  %781 = vst [vmem:[#allocation2 + $0x68] sm:$0xff] %v765_v50  ;;  %v607_v0 = vmul.f32 %v1849_v16, %v606_v53  ;;  %v633_v43 = vmul.f32 %v1893_v60, %v1858_v19  ;;  %v646_v1 = vsub.f32 1.5, %v645_v62  ;;  %vm630_vm7 = vmor %vm628_vm1, %vm629_vm4 }
 0x132   : > { %779 = vst [vmem:[#allocation2 + $0x18] sm:$0xff] %v763_v28  ;;  %vm649_vm6 = vweird.f32 %v1458_v32  ;;  %1463 = vrsqrt.f32 %v1891_v56  ;;  %v540_v3 = vmul.f32 0.125, %v519_v39  ;;  %v627_v5 = vmul.f32 %v1867_v17, %v626_v34 }
 0x133   : > { %777 = vst [vmem:[#allocation2] sm:$0xff] %v761_v61  ;;  %v611_v4 = vsel %vm610_vm5, %v1849_v16, %v607_v0  ;;  %v634_v6 = vmul.f32 %v1893_v60, %v633_v43  ;;  %v542_v7 = vmul.f32 0.125, %v523_v63  ;;  %v647_v40 = vmul.f32 %v1458_v32, %v646_v1  ;;  %vm650_vm9 = vmor %vm648_vm3, %vm649_vm6 }
 0x134   : > { %v726_v9 = vmul.f32 %v611_v4, %v1732_v10  ;;  %vm638_vm8 = vweird.f32 %v1858_v19  ;;  %v1914_v11 = vadd.f32 1e-05, %v540_v3  ;;  %v631_v15 = vsel %vm630_vm7, %v1867_v17, %v627_v5 }
 0x135   : > { %v635_v16 = vmul.f32 0.5, %v634_v6  ;;  %v1919_v18 = vadd.f32 1e-05, %v542_v7  ;;  %v544_v20 = vmul.f32 0.125, %v527_v44  ;;  %v525_v21 = vpop.xlane.xlu2 %524  ;;  %v728_v48 = vmul.f32 %v631_v15, %v1739_v12  ;;  %v529_v47 = vpop.xlane.xlu1 %528 }
 0x136   : > { %v1462_v13 = vpop.eup %1461  ;;  %v745_v10 = vmul.f32 %v1816_v42, %v726_v9  ;;  %v651_v14 = vsel %vm650_vm9, %v1458_v32, %v647_v40  ;;  %1465 = vrsqrt.f32 %v1914_v11  ;;  %vm639_vm10 = vweird.f32 %v1893_v60 }
 0x137   : > { %v730_v8 = vmul.f32 %v651_v14, %v1735_v2  ;;  %v636_v26 = vsub.f32 1.5, %v635_v16  ;;  %v653_v30 = vmul.f32 %v1462_v13, %v1888_v59  ;;  %v747_v33 = vmul.f32 %v1816_v42, %v728_v48  ;;  %vm640_vm11 = vmor %vm638_vm8, %vm639_vm10 }
 0x138   : > { %v1464_v17 = vpop.eup %1463  ;;  %v764_v27 = vadd.f32 %v1831_v29, %v745_v10  ;;  %1467 = vrsqrt.f32 %v1919_v18  ;;  %v543_v36 = vmul.f32 0.125, %v525_v21  ;;  %vm658_vm12 = vweird.f32 %v1888_v59 }
 0x139   : > { %v749_v12 = vmul.f32 %v1816_v42, %v730_v8  ;;  %v637_v32 = vmul.f32 %v1893_v60, %v636_v26  ;;  %v654_v37 = vmul.f32 %v1462_v13, %v653_v30  ;;  %v673_v2 = vmul.f32 %v1464_v17, %v1891_v56 }
 0x13a   : > { %780 = vst [vmem:[#allocation2 + $0x50] sm:$0xff] %v764_v27  ;;  %v766_v22 = vadd.f32 %v1831_v29, %v747_v33  ;;  %v1937_v38 = vadd.f32 1e-05, %v544_v20  ;;  %vm678_vm13 = vweird.f32 %v1891_v56  ;;  %v1944_v19 = vadd.f32 1e-05, %v543_v36 }
 0x13b   : > { %v768_v24 = vadd.f32 %v1831_v29, %v749_v12  ;;  %v641_v57 = vsel %vm640_vm11, %v1893_v60, %v637_v32  ;;  %v655_v39 = vmul.f32 0.5, %v654_v37  ;;  %v674_v45 = vmul.f32 %v1464_v17, %v673_v2 }
 0x13c   : > { %v1466_v58 = vpop.eup %1465  ;;  %782 = vst [vmem:[#allocation2 + $0x8] sm:$0xff] %v766_v22  ;;  %v729_v23 = vmul.f32 %v641_v57, %v1748_v25  ;;  %1469 = vrsqrt.f32 %v1937_v38  ;;  %vm659_vm14 = vweird.f32 %v1462_v13  ;;  %vm679_vm15 = vweird.f32 %v1464_v17 }
 0x13d   : > { %784 = vst [vmem:[#allocation2 + $0x40] sm:$0xff] %v768_v24  ;;  %v656_v50 = vsub.f32 1.5, %v655_v39  ;;  %v675_v51 = vmul.f32 0.5, %v674_v45  ;;  %v663_v28 = vmul.f32 %v1466_v58, %v1914_v11  ;;  %1471 = vrsqrt.f32 %v1944_v19  ;;  %vm660_vm0 = vmor %vm658_vm12, %vm659_vm14 }
 0x13e   : > { %v1468_v53 = vpop.eup %1467  ;;  %v748_v55 = vmul.f32 %v1816_v42, %v729_v23  ;;  %v545_v60 = vmul.f32 0.125, %v529_v47  ;;  %vm680_vm1 = vmor %vm678_vm13, %vm679_vm15  ;;  %vm669_vm2 = vweird.f32 %v1466_v58  ;;  %vm668_vm3 = vweird.f32 %v1914_v11 }
 0x13f   : > { %v657_v25 = vmul.f32 %v1462_v13, %v656_v50  ;;  %v676_v61 = vsub.f32 1.5, %v675_v51  ;;  %v664_v62 = vmul.f32 %v1466_v58, %v663_v28  ;;  %v683_v63 = vmul.f32 %v1468_v53, %v1919_v18  ;;  %vm670_vm5 = vmor %vm668_vm3, %vm669_vm2 }
 0x140   : > { %v767_v0 = vadd.f32 %v1831_v29, %v748_v55  ;;  %v1953_v34 = vadd.f32 1e-05, %v545_v60  ;;  %vm689_vm4 = vweird.f32 %v1468_v53  ;;  %vm688_vm6 = vweird.f32 %v1919_v18 }
 0x141   : > { %v661_v43 = vsel %vm660_vm0, %v1462_v13, %v657_v25  ;;  %v677_v1 = vmul.f32 %v1464_v17, %v676_v61  ;;  %v665_v3 = vmul.f32 0.5, %v664_v62  ;;  %v684_v44 = vmul.f32 %v1468_v53, %v683_v63  ;;  %vm690_vm7 = vmor %vm688_vm6, %vm689_vm4 }
 0x142   : > { %v1470_v4 = vpop.eup %1469  ;;  %783 = vst [vmem:[#allocation2 + $0x48] sm:$0xff] %v767_v0  ;;  %v731_v5 = vmul.f32 %v661_v43, %v1759_v35  ;;  %1473 = vrsqrt.f32 %v1953_v34  ;;  %vm708_vm8 = vweird.f32 %v1937_v38  ;;  %vm698_vm12 = vweird.f32 %v1944_v19 }
 0x143   : > { %v681_v6 = vsel %vm680_vm1, %v1464_v17, %v677_v1  ;;  %v666_v59 = vsub.f32 1.5, %v665_v3  ;;  %v685_v7 = vmul.f32 0.5, %v684_v44  ;;  %v703_v9 = vmul.f32 %v1470_v4, %v1937_v38  ;;  %v1472_v40 = vpop.eup %1471 }
 0x144   : > { %v750_v15 = vmul.f32 %v1816_v42, %v731_v5  ;;  %v733_v16 = vmul.f32 %v681_v6, %v1753_v31  ;;  %v693_v21 = vmul.f32 %v1472_v40, %v1944_v19  ;;  %vm709_vm9 = vweird.f32 %v1470_v4 }
 0x145   : > { %v667_v35 = vmul.f32 %v1466_v58, %v666_v59  ;;  %v686_v20 = vsub.f32 1.5, %v685_v7  ;;  %v704_v56 = vmul.f32 %v1470_v4, %v703_v9  ;;  %vm699_vm10 = vweird.f32 %v1472_v40  ;;  %vm710_vm11 = vmor %vm708_vm8, %vm709_vm9 }
 0x146   : > { %v769_v13 = vadd.f32 %v1831_v29, %v750_v15  ;;  %v752_v10 = vmul.f32 %v1816_v42, %v733_v16  ;;  %v694_v31 = vmul.f32 %v1472_v40, %v693_v21  ;;  %vm700_vm13 = vmor %vm698_vm12, %vm699_vm10  ;;  %vm718_vm15 = vweird.f32 %v1953_v34 }
 0x147   : > { %v671_v48 = vsel %vm670_vm5, %v1466_v58, %v667_v35  ;;  %v687_v14 = vmul.f32 %v1468_v53, %v686_v20  ;;  %v705_v8 = vmul.f32 0.5, %v704_v56 }
 0x148   : > { %v1474_v26 = vpop.eup %1473  ;;  %785 = vst [vmem:[#allocation2 + $0x20] sm:$0xff] %v769_v13  ;;  %v771_v11 = vadd.f32 %v1831_v29, %v752_v10  ;;  %v732_v30 = vmul.f32 %v671_v48, %v1766_v41  ;;  %v695_v33 = vmul.f32 0.5, %v694_v31 }
 0x149   : > { %v691_v17 = vsel %vm690_vm7, %v1468_v53, %v687_v14  ;;  %v706_v27 = vsub.f32 1.5, %v705_v8  ;;  %v713_v18 = vmul.f32 %v1474_v26, %v1953_v34  ;;  %vm719_vm14 = vweird.f32 %v1474_v26 }
 0x14a   : > { %787 = vst [vmem:[#allocation2 + $0x38] sm:$0xff] %v771_v11  ;;  %v751_v36 = vmul.f32 %v1816_v42, %v732_v30  ;;  %v734_v12 = vmul.f32 %v691_v17, %v1777_v49  ;;  %v696_v37 = vsub.f32 1.5, %v695_v33  ;;  %vm720_vm0 = vmor %vm718_vm15, %vm719_vm14 }
 0x14b   : > { %v707_v32 = vmul.f32 %v1470_v4, %v706_v27  ;;  %v714_v2 = vmul.f32 %v1474_v26, %v713_v18 }
 0x14c   : > { %v770_v41 = vadd.f32 %v1831_v29, %v751_v36  ;;  %v753_v22 = vmul.f32 %v1816_v42, %v734_v12  ;;  %v697_v57 = vmul.f32 %v1472_v40, %v696_v37 }
 0x14d   : > { %v711_v24 = vsel %vm710_vm11, %v1470_v4, %v707_v32  ;;  %v715_v39 = vmul.f32 0.5, %v714_v2 }
 0x14e   : > { %786 = vst [vmem:[#allocation2 + $0x10] sm:$0xff] %v770_v41  ;;  %v772_v45 = vadd.f32 %v1831_v29, %v753_v22  ;;  %v736_v49 = vmul.f32 %v711_v24, %v1771_v46  ;;  %v701_v47 = vsel %vm700_vm13, %v1472_v40, %v697_v57 }
 0x14f   : > { %v716_v58 = vsub.f32 1.5, %v715_v39  ;;  %v735_v38 = vmul.f32 %v701_v47, %v1784_v52 }
 0x150   : > { %788 = vst [vmem:[#allocation2 + $0x60] sm:$0xff] %v772_v45  ;;  %v755_v23 = vmul.f32 %v1816_v42, %v736_v49 }
 0x151   : > { %v717_v50 = vmul.f32 %v1474_v26, %v716_v58  ;;  %v754_v51 = vmul.f32 %v1816_v42, %v735_v38 }
 0x152   : > { %v774_v19 = vadd.f32 %v1831_v29, %v755_v23 }
 0x153   : > { %v721_v28 = vsel %vm720_vm0, %v1474_v26, %v717_v50  ;;  %v773_v46 = vadd.f32 %v1831_v29, %v754_v51 }
 0x154   : > { %790 = vst [vmem:[#allocation2 + $0x78] sm:$0xff] %v774_v19  ;;  %v737_v53 = vmul.f32 %v721_v28, %v1790_v54 }
 0x155   : > { %789 = vst [vmem:[#allocation2 + $0x70] sm:$0xff] %v773_v46 }
 0x156   : > { %v756_v55 = vmul.f32 %v1816_v42, %v737_v53 }
 0x158   : > { %v775_v60 = vadd.f32 %v1831_v29, %v756_v55 }
 0x15a   : > { %791 = vst [vmem:[#allocation2 + $0x28] sm:$0xff] %v775_v60 }
 0x15b PF: > { %v1375_v52 = vld [vmem:[%s1603_s16 + $0x38] sm:$0xff]  ;;  %v1374_v25 = vld [vmem:[%s1603_s16 + $0x30] sm:$0xff]  ;;  %v1373_v54 = vld [vmem:[%s1603_s16 + $0x28] sm:$0xff]  ;;  %p1361_p8 = scmp.ne.s32.totalorder %s1499_s24, 1 }
 0x15c   : > { %884 = vmatpush.bf16.msra.mxu0 %v1375_v52  ;;  %1384 = vmatpush.bf16.msra.mxu2 %v1375_v52  ;;  %v1372_v42 = vld [vmem:[%s1603_s16 + $0x20] sm:$0xff]  ;;  %v1371_v29 = vld [vmem:[%s1603_s16 + $0x18] sm:$0xff]  ;;  %v1370_v61 = vld [vmem:[%s1603_s16 + $0x10] sm:$0xff] }
 0x15d   : > { %v1369_v62 = vld [vmem:[%s1603_s16 + $0x8] sm:$0xff]  ;;  %v1368_v63 = vld [vmem:[%s1603_s16] sm:$0xff]  ;;  %v792_v0 = vld [vmem:[#allocation2 + $0x30] sm:$0xff] }
 0x15e   : > { %v793_v34 = vld [vmem:[#allocation2] sm:$0xff]  ;;  %v794_v4 = vld [vmem:[#allocation2 + $0x58] sm:$0xff]  ;;  %v802_v6 = vld [vmem:[#allocation2 + $0x10] sm:$0xff] }
 0x15f   : > { %v800_v43 = vld [vmem:[#allocation2 + $0x40] sm:$0xff]  ;;  %v808_v3 = vpack.c.bf16 %v793_v34, %v792_v0  ;;  %v795_v5 = vld [vmem:[#allocation2 + $0x18] sm:$0xff]  ;;  %v1382_v15 = vld [vmem:[%s1612_s22 + $0x30] sm:$0xff] }
 0x160   : > { %885 = vmatpush.bf16.msra.mxu0 %v1374_v25  ;;  %1385 = vmatpush.bf16.msra.mxu2 %v1374_v25  ;;  %v801_v1 = vld [vmem:[#allocation2 + $0x20] sm:$0xff]  ;;  %v803_v59 = vld [vmem:[#allocation2 + $0x38] sm:$0xff]  ;;  %v809_v7 = vpack.c.bf16 %v795_v5, %v794_v4  ;;  %v1381_v16 = vld [vmem:[%s1612_s22 + $0x28] sm:$0xff] }
 0x161   : > { %v812_v44 = vpack.c.bf16 %v801_v1, %v800_v43  ;;  %v813_v9 = vpack.c.bf16 %v803_v59, %v802_v6  ;;  %v1383_v40 = vld [vmem:[%s1612_s22 + $0x38] sm:$0xff]  ;;  %v796_v35 = vld [vmem:[#allocation2 + $0x50] sm:$0xff]  ;;  %v797_v20 = vld [vmem:[#allocation2 + $0x68] sm:$0xff] }
 0x162   : > { %1057 = vmatpush.bf16.msra.mxu1 %v1383_v40  ;;  %1392 = vmatpush.bf16.msra.mxu3 %v1383_v40  ;;  %v804_v56 = vld [vmem:[#allocation2 + $0x60] sm:$0xff]  ;;  %v805_v21 = vld [vmem:[#allocation2 + $0x70] sm:$0xff]  ;;  %v810_v10 = vpack.c.bf16 %v797_v20, %v796_v35  ;;  %v798_v14 = vld [vmem:[#allocation2 + $0x8] sm:$0xff] }
 0x163   : > { %v1380_v13 = vld [vmem:[%s1612_s22 + $0x20] sm:$0xff]  ;;  %v814_v48 = vpack.c.bf16 %v805_v21, %v804_v56  ;;  %v799_v8 = vld [vmem:[#allocation2 + $0x48] sm:$0xff]  ;;  %v806_v31 = vld [vmem:[#allocation2 + $0x78] sm:$0xff] }
 0x164   : > { %886 = vmatpush.bf16.msra.mxu0 %v1373_v54  ;;  %1386 = vmatpush.bf16.msra.mxu2 %v1373_v54  ;;  %v807_v26 = vld [vmem:[#allocation2 + $0x28] sm:$0xff]  ;;  %v811_v11 = vpack.c.bf16 %v799_v8, %v798_v14  ;;  %v1379_v17 = vld [vmem:[%s1612_s22 + $0x18] sm:$0xff]  ;;  %v1378_v27 = vld [vmem:[%s1612_s22 + $0x10] sm:$0xff] }
 0x165   : > { %v815_v30 = vpack.c.bf16 %v807_v26, %v806_v31  ;;  %v1377_v33 = vld [vmem:[%s1612_s22 + $0x8] sm:$0xff]  ;;  %v1376_v18 = vld [vmem:[%s1612_s22] sm:$0xff] }
 0x166   : > { %1058 = vmatpush.bf16.msra.mxu1 %v1382_v15  ;;  %1393 = vmatpush.bf16.msra.mxu3 %v1382_v15  ;;  %v1475_v12 = vld [vmem:[%s345_s19] ss:$0 sm:$0xff] }
 0x167   : > { %v1476_v26 = vld [vmem:[%s353_s10] ss:$0 sm:$0xff] }
 0x168   : > { %887 = vmatpush.bf16.msra.mxu0 %v1372_v42  ;;  %1387 = vmatpush.bf16.msra.mxu2 %v1372_v42 }
 0x16a   : > { %1059 = vmatpush.bf16.msra.mxu1 %v1381_v16  ;;  %1394 = vmatpush.bf16.msra.mxu3 %v1381_v16 }
 0x16c   : > { %888 = vmatpush.bf16.msra.mxu0 %v1371_v29  ;;  %1388 = vmatpush.bf16.msra.mxu2 %v1371_v29 }
 0x16e   : > { %1060 = vmatpush.bf16.msra.mxu1 %v1380_v13  ;;  %1395 = vmatpush.bf16.msra.mxu3 %v1380_v13 }
 0x170   : > { %889 = vmatpush.bf16.msra.mxu0 %v1370_v61  ;;  %1389 = vmatpush.bf16.msra.mxu2 %v1370_v61 }
 0x172   : > { %1061 = vmatpush.bf16.msra.mxu1 %v1379_v17  ;;  %1396 = vmatpush.bf16.msra.mxu3 %v1379_v17 }
 0x174   : > { %890 = vmatpush.bf16.msra.mxu0 %v1369_v62  ;;  %1390 = vmatpush.bf16.msra.mxu2 %v1369_v62 }
 0x176   : > { %1062 = vmatpush.bf16.msra.mxu1 %v1378_v27  ;;  %1397 = vmatpush.bf16.msra.mxu3 %v1378_v27 }
 0x178   : > { %891 = vmatpush.bf16.msra.mxu0 %v1368_v63  ;;  %1391 = vmatpush.bf16.msra.mxu2 %v1368_v63 }
 0x17a   : > { %1063 = vmatpush.bf16.msra.mxu1 %v1377_v33  ;;  %1398 = vmatpush.bf16.msra.mxu3 %v1377_v33 }
 0x17b   : > { %892 = vmatmul.bf16.vlgmr.msra.gmra.mxu0 %v808_v3  ;;  %912 = vmatmul.bf16.vlgmr.msra.gmra.mxu2 %v812_v44 }
 0x17e   : > { %1064 = vmatpush.bf16.msra.mxu1 %v1376_v18  ;;  %1399 = vmatpush.bf16.msra.mxu3 %v1376_v18 }
 0x18b   : > { %897 = vmatmul.bf16.gmra.mxu0 %v809_v7  ;;  %917 = vmatmul.bf16.gmra.mxu2 %v813_v9 }
 0x19b   : > { %902 = vmatmul.bf16.gmra.mxu0 %v810_v10  ;;  %922 = vmatmul.bf16.gmra.mxu2 %v814_v48 }
 0x1ab   : > { %907 = vmatmul.bf16.gmra.mxu0 %v811_v11  ;;  %927 = vmatmul.bf16.gmra.mxu2 %v815_v30 }
 0x1f8   : > { %v893_v36 = vpop.f32.mrf.mxu0 }
 0x1f9   : > { %v894_v32 = vadd.f32 %v1475_v12, %v893_v36 }
 0x1fb   : > { %v965_v41 = vmax.f32 %v894_v32, 0.0 }
 0x1fe   : > { %v913_v37 = vpop.f32.mrf.mxu2 }
 0x1ff   : > { %v914_v57 = vadd.f32 %v1475_v12, %v913_v37 }
 0x200   : > { %v895_v2 = vpop.f32.mrf.mxu0 }
 0x201   : > { %v896_v22 = vadd.f32 %v1475_v12, %v895_v2  ;;  %v973_v58 = vmax.f32 %v914_v57, 0.0 }
 0x203   : > { %v966_v24 = vmax.f32 %v896_v22, 0.0 }
 0x205   : > { %v981_v39 = vpack.c.bf16 %v966_v24, %v965_v41 }
 0x206   : > { %v915_v45 = vpop.f32.mrf.mxu2 }
 0x207   : > { %v916_v49 = vadd.f32 %v1475_v12, %v915_v45  ;;  %1065 = vmatmul.bf16.vlgmr.msra.gmra.mxu1 %v981_v39 }
 0x208   : > { %v898_v47 = vpop.f32.mrf.mxu0 }
 0x209   : > { %v974_v23 = vmax.f32 %v916_v49, 0.0  ;;  %v899_v50 = vadd.f32 %v1475_v12, %v898_v47 }
 0x20b   : > { %v985_v38 = vpack.c.bf16 %v974_v23, %v973_v58  ;;  %v967_v28 = vmax.f32 %v899_v50, 0.0 }
 0x20d   : > { %1085 = vmatmul.bf16.vlgmr.msra.gmra.mxu3 %v985_v38 }
 0x20e   : > { %v918_v19 = vpop.f32.mrf.mxu2 }
 0x20f   : > { %v919_v55 = vadd.f32 %v1475_v12, %v918_v19 }
 0x210   : > { %v900_v51 = vpop.f32.mrf.mxu0 }
 0x211   : > { %v901_v46 = vadd.f32 %v1475_v12, %v900_v51  ;;  %v975_v42 = vmax.f32 %v919_v55, 0.0 }
 0x213   : > { %v968_v53 = vmax.f32 %v901_v46, 0.0 }
 0x215   : > { %v982_v60 = vpack.c.bf16 %v968_v53, %v967_v28 }
 0x216   : > { %v920_v52 = vpop.f32.mrf.mxu2 }
 0x217   : > { %v921_v25 = vadd.f32 %v1475_v12, %v920_v52  ;;  %1070 = vmatmul.bf16.gmra.mxu1 %v982_v60 }
 0x218   : > { %v903_v54 = vpop.f32.mrf.mxu0 }
 0x219   : > { %v976_v29 = vmax.f32 %v921_v25, 0.0  ;;  %v904_v62 = vadd.f32 %v1475_v12, %v903_v54 }
 0x21b   : > { %v986_v61 = vpack.c.bf16 %v976_v29, %v975_v42  ;;  %v969_v34 = vmax.f32 %v904_v62, 0.0 }
 0x21d   : > { %1090 = vmatmul.bf16.gmra.mxu3 %v986_v61 }
 0x21e   : > { %v923_v63 = vpop.f32.mrf.mxu2 }
 0x21f   : > { %v924_v3 = vadd.f32 %v1475_v12, %v923_v63 }
 0x220   : > { %v905_v0 = vpop.f32.mrf.mxu0 }
 0x221   : > { %v906_v43 = vadd.f32 %v1475_v12, %v905_v0  ;;  %v977_v59 = vmax.f32 %v924_v3, 0.0 }
 0x223   : > { %v970_v1 = vmax.f32 %v906_v43, 0.0 }
 0x225   : > { %v983_v44 = vpack.c.bf16 %v970_v1, %v969_v34 }
 0x226   : > { %v925_v4 = vpop.f32.mrf.mxu2 }
 0x227   : > { %v926_v5 = vadd.f32 %v1475_v12, %v925_v4  ;;  %1075 = vmatmul.bf16.gmra.mxu1 %v983_v44 }
 0x228   : > { %v908_v6 = vpop.f32.mrf.mxu0 }
 0x229   : > { %v978_v7 = vmax.f32 %v926_v5, 0.0  ;;  %v909_v40 = vadd.f32 %v1475_v12, %v908_v6 }
 0x22b   : > { %v987_v9 = vpack.c.bf16 %v978_v7, %v977_v59  ;;  %v971_v35 = vmax.f32 %v909_v40, 0.0 }
 0x22d   : > { %1095 = vmatmul.bf16.gmra.mxu3 %v987_v9 }
 0x22e   : > { %v928_v15 = vpop.f32.mrf.mxu2 }
 0x22f   : > { %v929_v21 = vadd.f32 %v1475_v12, %v928_v15 }
 0x230   : > { %v910_v16 = vpop.f32.mrf.mxu0 }
 0x231   : > { %v911_v20 = vadd.f32 %v1475_v12, %v910_v16  ;;  %v979_v14 = vmax.f32 %v929_v21, 0.0 }
 0x233   : > { %v972_v56 = vmax.f32 %v911_v20, 0.0 }
 0x235   : > { %v984_v13 = vpack.c.bf16 %v972_v56, %v971_v35 }
 0x236   : > { %v930_v10 = vpop.f32.mrf.mxu2 }
 0x237   : > { %v931_v48 = vadd.f32 %v1475_v12, %v930_v10  ;;  %1080 = vmatmul.bf16.gmra.mxu1 %v984_v13 }
 0x239   : > { %v980_v8 = vmax.f32 %v931_v48, 0.0 }
 0x23b   : > { %v988_v31 = vpack.c.bf16 %v980_v8, %v979_v14 }
 0x23d   : > { %1100 = vmatmul.bf16.gmra.mxu3 %v988_v31 }
 0x284   : > { %v1066_v11 = vpop.f32.mrf.mxu1 }
 0x285   : > { %v1067_v30 = vadd.f32 %v1476_v26, %v1066_v11 }
 0x287   : > { %1106 = vst [vmem:[#allocation2 + $0x30] sm:$0xff] %v1067_v30 }
 0x28c   : > { %v1068_v17 = vpop.f32.mrf.mxu1 }
 0x28d   : > { %v1069_v27 = vadd.f32 %v1476_v26, %v1068_v17 }
 0x28f   : > { %1107 = vst [vmem:[#allocation2] sm:$0xff] %v1069_v27 }
 0x290   : > { %v1086_v33 = vpop.f32.mrf.mxu3 }
 0x291   : > { %v2018_v18 = vadd.f32 %v1476_v26, %v1086_v33 }
 0x293   : > { %1114 = vst [vmem:[#allocation2 + $0x40] sm:$0xff] %v2018_v18 }
 0x294   : > { %v1071_v36 = vpop.f32.mrf.mxu1 }
 0x295   : > { %v1072_v12 = vadd.f32 %v1476_v26, %v1071_v36 }
 0x297   : > { %1108 = vst [vmem:[#allocation2 + $0x58] sm:$0xff] %v1072_v12 }
 0x298   : > { %v1088_v32 = vpop.f32.mrf.mxu3 }
 0x299   : > { %v2021_v37 = vadd.f32 %v1476_v26, %v1088_v32 }
 0x29b   : > { %1115 = vst [vmem:[#allocation2 + $0x20] sm:$0xff] %v2021_v37 }
 0x29c   : > { %v1073_v2 = vpop.f32.mrf.mxu1 }
 0x29d   : > { %v1074_v41 = vadd.f32 %v1476_v26, %v1073_v2 }
 0x29f   : > { %1109 = vst [vmem:[#allocation2 + $0x18] sm:$0xff] %v1074_v41 }
 0x2a0   : > { %v1091_v22 = vpop.f32.mrf.mxu3 }
 0x2a1   : > { %v1092_v24 = vadd.f32 %v1476_v26, %v1091_v22 }
 0x2a3   : > { %1116 = vst [vmem:[#allocation2 + $0x10] sm:$0xff] %v1092_v24 }
 0x2a4   : > { %v1076_v57 = vpop.f32.mrf.mxu1 }
 0x2a5   : > { %v1077_v39 = vadd.f32 %v1476_v26, %v1076_v57 }
 0x2a7   : > { %1110 = vst [vmem:[#allocation2 + $0x50] sm:$0xff] %v1077_v39 }
 0x2a8   : > { %v1093_v45 = vpop.f32.mrf.mxu3 }
 0x2a9   : > { %v1094_v49 = vadd.f32 %v1476_v26, %v1093_v45 }
 0x2ab   : > { %1117 = vst [vmem:[#allocation2 + $0x38] sm:$0xff] %v1094_v49 }
 0x2ac   : > { %v1078_v47 = vpop.f32.mrf.mxu1 }
 0x2ad   : > { %v1079_v58 = vadd.f32 %v1476_v26, %v1078_v47 }
 0x2af   : > { %1111 = vst [vmem:[#allocation2 + $0x68] sm:$0xff] %v1079_v58 }
 0x2b0   : > { %v1096_v23 = vpop.f32.mrf.mxu3 }
 0x2b1   : > { %v1097_v38 = vadd.f32 %v1476_v26, %v1096_v23 }
 0x2b3   : > { %1118 = vst [vmem:[#allocation2 + $0x60] sm:$0xff] %v1097_v38 }
 0x2b4   : > { %v1081_v50 = vpop.f32.mrf.mxu1 }
 0x2b5   : > { %v1082_v19 = vadd.f32 %v1476_v26, %v1081_v50 }
 0x2b7   : > { %1112 = vst [vmem:[#allocation2 + $0x8] sm:$0xff] %v1082_v19 }
 0x2b8   : > { %v1098_v51 = vpop.f32.mrf.mxu3 }
 0x2b9   : > { %v1099_v28 = vadd.f32 %v1476_v26, %v1098_v51 }
 0x2bb   : > { %1119 = vst [vmem:[#allocation2 + $0x70] sm:$0xff] %v1099_v28 }
 0x2bc   : > { %v1083_v46 = vpop.f32.mrf.mxu1 }
 0x2bd   : > { %v1084_v53 = vadd.f32 %v1476_v26, %v1083_v46 }
 0x2bf   : > { %1113 = vst [vmem:[#allocation2 + $0x48] sm:$0xff] %v1084_v53 }
 0x2c0   : > { %v1101_v55 = vpop.f32.mrf.mxu3 }
 0x2c1   : > { %v1102_v60 = vadd.f32 %v1476_v26, %v1101_v55 }
 0x2c3   : > { %1120 = vst [vmem:[#allocation2 + $0x78] sm:$0xff] %v1102_v60 }
 0x2c7   : > { %1125 = sbr.rel (%p1361_p8) target bundleno = 735 (0x2df), region = 56 }
 0x2c8   : > { %v1103_v52 = vpop.f32.mrf.mxu3 }
 0x2c9   : > { %v1104_v25 = vadd.f32 %v1476_v26, %v1103_v52 }
 0x2cb   : > { %1121 = vst [vmem:[#allocation2 + $0x28] sm:$0xff] %v1104_v25 }
 0x2cc   : > { %v1126_v54 = vld [vmem:[%s1597_s12] sm:$0xff]  ;;  %v1127_v42 = vld [vmem:[%s1597_s12 + $0x8] sm:$0xff]  ;;  %v1128_v29 = vld [vmem:[%s1597_s12 + $0x10] sm:$0xff] }
 0x2cd   : > { %v1142_v61 = vadd.f32 %v1126_v54, %v1067_v30  ;;  %v1143_v62 = vadd.f32 %v1127_v42, %v1069_v27  ;;  %v1144_v63 = vadd.f32 %v1128_v29, %v1072_v12  ;;  %v1129_v0 = vld [vmem:[%s1597_s12 + $0x18] sm:$0xff]  ;;  %v1130_v34 = vld [vmem:[%s1597_s12 + $0x20] sm:$0xff]  ;;  %v1131_v43 = vld [vmem:[%s1597_s12 + $0x28] sm:$0xff] }
 0x2ce   : > { %v1145_v1 = vadd.f32 %v1129_v0, %v1074_v41  ;;  %v1132_v3 = vld [vmem:[%s1597_s12 + $0x30] sm:$0xff]  ;;  %v1146_v44 = vadd.f32 %v1130_v34, %v1077_v39  ;;  %v1133_v4 = vld [vmem:[%s1597_s12 + $0x38] sm:$0xff]  ;;  %v1147_v5 = vadd.f32 %v1131_v43, %v1079_v58  ;;  %v1134_v6 = vld [vmem:[%s1597_s12 + $0x40] sm:$0xff] }
 0x2cf   : > { %1158 = vst [vmem:[%s1621_s30] sm:$0xff] %v1142_v61  ;;  %v1148_v59 = vadd.f32 %v1132_v3, %v1082_v19  ;;  %v1135_v7 = vld [vmem:[%s1597_s12 + $0x48] sm:$0xff]  ;;  %v1149_v9 = vadd.f32 %v1133_v4, %v1084_v53  ;;  %v1136_v40 = vld [vmem:[%s1597_s12 + $0x50] sm:$0xff]  ;;  %v1150_v15 = vadd.f32 %v1134_v6, %v2018_v18  ;;  %v1137_v16 = vld [vmem:[%s1597_s12 + $0x58] sm:$0xff] }
 0x2d0   : > { %1159 = vst [vmem:[%s1621_s30 + $0x8] sm:$0xff] %v1143_v62  ;;  %v1151_v35 = vadd.f32 %v1135_v7, %v2021_v37  ;;  %v1138_v20 = vld [vmem:[%s1597_s12 + $0x60] sm:$0xff]  ;;  %v1152_v56 = vadd.f32 %v1136_v40, %v1092_v24  ;;  %v1139_v21 = vld [vmem:[%s1597_s12 + $0x68] sm:$0xff]  ;;  %v1153_v13 = vadd.f32 %v1137_v16, %v1094_v49  ;;  %v1140_v10 = vld [vmem:[%s1597_s12 + $0x70] sm:$0xff] }
 0x2d1   : > { %1160 = vst [vmem:[%s1621_s30 + $0x10] sm:$0xff] %v1144_v63  ;;  %v1154_v48 = vadd.f32 %v1138_v20, %v1097_v38  ;;  %v1141_v14 = vld [vmem:[%s1597_s12 + $0x78] sm:$0xff]  ;;  %v1155_v8 = vadd.f32 %v1139_v21, %v1099_v28  ;;  %v1156_v31 = vadd.f32 %v1140_v10, %v1102_v60 }
 0x2d2   : > { %1161 = vst [vmem:[%s1621_s30 + $0x18] sm:$0xff] %v1145_v1  ;;  %v1157_v26 = vadd.f32 %v1141_v14, %v1104_v25 }
 0x2d3   : > { %1162 = vst [vmem:[%s1621_s30 + $0x20] sm:$0xff] %v1146_v44 }
 0x2d4   : > { %1163 = vst [vmem:[%s1621_s30 + $0x28] sm:$0xff] %v1147_v5 }
 0x2d5   : > { %1164 = vst [vmem:[%s1621_s30 + $0x30] sm:$0xff] %v1148_v59 }
 0x2d6   : > { %1165 = vst [vmem:[%s1621_s30 + $0x38] sm:$0xff] %v1149_v9 }
 0x2d7   : > { %1166 = vst [vmem:[%s1621_s30 + $0x40] sm:$0xff] %v1150_v15 }
 0x2d8   : > { %1167 = vst [vmem:[%s1621_s30 + $0x48] sm:$0xff] %v1151_v35 }
 0x2d9   : > { %1168 = vst [vmem:[%s1621_s30 + $0x50] sm:$0xff] %v1152_v56 }
 0x2da   : > { %1169 = vst [vmem:[%s1621_s30 + $0x58] sm:$0xff] %v1153_v13 }
 0x2db   : > { %1170 = vst [vmem:[%s1621_s30 + $0x60] sm:$0xff] %v1154_v48 }
 0x2dc   : > { %1171 = vst [vmem:[%s1621_s30 + $0x68] sm:$0xff] %v1155_v8 }
 0x2dd   : > { %1172 = vst [vmem:[%s1621_s30 + $0x70] sm:$0xff] %v1156_v31 }
 0x2de   : > { %1173 = vst [vmem:[%s1621_s30 + $0x78] sm:$0xff] %v1157_v26 }
 0x2df PF: > { %s17_s28 = sadd.s32 1, %s1515_s28   ;;  %s2085_s8 = sld [smem:[#allocation3_spill]] }
 0x2e0   : > { %p14_p9 = scmp.ge.s32.totalorder %s17_s28, 6   ;;  %s2086_s24 = smov %s1507_s26 }
 0x2e1   : > { %s2087_s25 = smov %s1511_s27  ;;  %s2088_s26 = smov %s2091_s29 }
 0x2e2   :  { %16 = sbr.rel (!%p14_p9) target bundleno = 3 (0x3), region = 98 }
 0x2e5   : > { %s2089_s27 = smov %s2085_s8 }

</bundles_post_ra>
